<compile_context>
chip_gen: v7x
topology: tpu7x:2x2x1
jax: 0.10.0
libtpu: 0.0.40
codegen_flags: <defaults>
</compile_context>

<pallas_src>
import functools

import jax
import jax.numpy as jnp
import numpy as np
from jax.experimental import pallas as pl
from jax.experimental.pallas import tpu as pltpu

H = 32          # hidden size
B_TILE = 8      # sublane tile: batch rows per grid step (free up to 8 in f32)


def rul_kernel(x_ref, wih0_ref, b0_ref, whh0_ref, wih1_ref, whh1_ref, b1_ref,
               wfc_ref, bfc_ref, out_ref, *, mxu_dtype, unroll):
    """One batch tile of the full forward.

    x_ref:            (T, B, 1) f32 raw inputs (time-major).
    wih0, b0, b1:     (1, 4H) f32
    whh0, wih1, whh1: (H, 4H) in `mxu_dtype` (pre-cast in the wrapper)
    wfc: (1, H)  bfc: (1, 1)  out_ref: (B, 1)
    Gate order is PyTorch's [i, f, g, o].
    """
    T, B, _ = x_ref.shape

    # Hoisted once: weights live in vregs for the whole recurrence.
    wih0 = wih0_ref[...]                       # f32, VPU broadcast operand
    b0 = b0_ref[...]
    whh0 = whh0_ref[...]                       # already mxu_dtype
    wih1 = wih1_ref[...]
    whh1 = whh1_ref[...]
    b1 = b1_ref[...]

    # Constant lane masks for the single-tanh gate activation:
    #   sigmoid(x) = 0.5 * tanh(0.5 * x) + 0.5   (i/f/o lanes)
    #   tanh(x)                                   (g lanes)
    lane = jax.lax.broadcasted_iota(jnp.int32, (1, 4 * H), 1)
    is_g = (lane >= 2 * H) & (lane < 3 * H)
    scale = jnp.where(is_g, 1.0, 0.5).astype(jnp.float32)     # pre & post mul
    shift = jnp.where(is_g, 0.0, 0.5).astype(jnp.float32)     # post add

    def cell(gates, c_prev):
        t = jnp.tanh(gates * scale)              # single EUP push for all gates
        act = t * scale + shift                  # sigmoid(i,f,o) / tanh(g)
        i = act[:, 0 * H:1 * H]
        f = act[:, 1 * H:2 * H]
        g = act[:, 2 * H:3 * H]
        o = act[:, 3 * H:4 * H]
        c = f * c_prev + i * g                   # f32 cell update
        h = o * jnp.tanh(c)
        return h, c

    zeros = jnp.zeros((B, H), jnp.float32)

    def step(t, carry):
        h0, c0, h1, c1 = carry
        # --- prev-state / constant work: schedules in the previous step's
        #     shadow, none of it sits between h0_t and h1_t. ---
        g1_hh = jnp.dot(h1.astype(mxu_dtype), whh1,
                        preferred_element_type=jnp.float32) + b1
        g0_in = x_ref[t] * wih0 + b0             # (B,1)*(1,4H) VPU broadcast
        gates0 = g0_in + jnp.dot(h0.astype(mxu_dtype), whh0,
                                 preferred_element_type=jnp.float32)
        h0, c0 = cell(gates0, c0)
        # --- only this dot + VPU add are on the h0_t -> h1_t chain ---
        gates1 = g1_hh + jnp.dot(h0.astype(mxu_dtype), wih1,
                                 preferred_element_type=jnp.float32)
        h1, c1 = cell(gates1, c1)
        return (h0, c0, h1, c1)

    h0, c0, h1, c1 = jax.lax.fori_loop(
        0, T, step, (zeros, zeros, zeros, zeros), unroll=unroll)

    # fc(out[:, -1, :]) as VPU multiply + lane reduction (skip an N=1 MXU pass).
    out_ref[...] = (jnp.sum(h1 * wfc_ref[...], axis=1, keepdims=True)
                    + bfc_ref[...])


def rul_forward(x, p, mxu_dtype=jnp.float32, unroll=8):
    """x: (B, T, 1) float32, batch_first (as in the PyTorch module).

    mxu_dtype: dtype of the MXU matmul operands. jnp.bfloat16 is the
      recommended setting on v5e (f32 operands multi-pass its bf16-only MXU)
      and is cheaper on v6e/v7x too. Note h0/h1 are re-quantized every step,
      so re-validate drift for long sequences; cell state and all elementwise
      math stay f32 either way.
    """
    B, T, _ = x.shape
    b_pad = -(-B // B_TILE) * B_TILE            # pad batch to the sublane tile

    x_tm = jnp.transpose(x, (1, 0, 2)).astype(jnp.float32)   # (T, B, 1)
    if b_pad != B:
        x_tm = jnp.pad(x_tm, ((0, 0), (0, b_pad - B), (0, 0)))

    # Pre-cast MXU operand weights so they arrive in VMEM already packed.
    whh0 = p["whh0"].astype(mxu_dtype)
    wih1 = p["wih1"].astype(mxu_dtype)
    whh1 = p["whh1"].astype(mxu_dtype)

    def rep(shape):   # weights: same (full) block for every batch tile
        return pl.BlockSpec(shape, lambda b: (0,) * len(shape))

    out = pl.pallas_call(
        functools.partial(rul_kernel, mxu_dtype=mxu_dtype,
                          unroll=min(unroll, T)),
        out_shape=jax.ShapeDtypeStruct((b_pad, 1), jnp.float32),
        grid_spec=pltpu.PrefetchScalarGridSpec(
            num_scalar_prefetch=0,
            grid=(b_pad // B_TILE,),
            in_specs=[
                pl.BlockSpec((T, B_TILE, 1), lambda b: (0, b, 0)),   # x
                rep((1, 4 * H)),     # wih0
                rep((1, 4 * H)),     # b0
                rep((H, 4 * H)),     # whh0
                rep((H, 4 * H)),     # wih1
                rep((H, 4 * H)),     # whh1
                rep((1, 4 * H)),     # b1
                rep((1, H)),         # wfc
                rep((1, 1)),         # bfc
            ],
            out_specs=pl.BlockSpec((B_TILE, 1), lambda b: (b, 0)),
        ),
        # Batch tiles are independent -> shard across v7x's two TensorCores.
        # VMEM residency is tiny (raw x + ~70 KiB of weights), so the default
        # scoped-VMEM limit needs no override even at production T/B.
        compiler_params=pltpu.CompilerParams(
            dimension_semantics=("parallel",)),
    )(x_tm, p["wih0"], p["b0"], whh0, wih1, whh1, p["b1"], p["wfc"], p["bfc"])
    return jnp.squeeze(out[:B])   # matches .squeeze() in PyTorch


def init_params(key):
    """Deterministic init matching PyTorch shapes (weights pre-transposed)."""
    k = 1.0 / np.sqrt(H)
    keys = jax.random.split(key, 10)

    def u(kk, shape, bound):
        return jax.random.uniform(kk, shape, jnp.float32, -bound, bound)

    # layer 0: W_ih (4H, 1), W_hh (4H, H), b_ih (4H,), b_hh (4H,)
    wih0 = u(keys[0], (4 * H, 1), k).T          # -> (1, 4H)
    whh0 = u(keys[1], (4 * H, H), k).T          # -> (H, 4H)
    b0 = (u(keys[2], (4 * H,), k) + u(keys[3], (4 * H,), k)).reshape(1, 4 * H)
    # layer 1: W_ih (4H, H), W_hh (4H, H)
    wih1 = u(keys[4], (4 * H, H), k).T          # -> (H, 4H)
    whh1 = u(keys[5], (4 * H, H), k).T          # -> (H, 4H)
    b1 = (u(keys[6], (4 * H,), k) + u(keys[7], (4 * H,), k)).reshape(1, 4 * H)
    # fc: weight (1, 32), bias (1,)
    wfc = u(keys[8], (1, H), k)                 # (1, H)  (row form)
    bfc = u(keys[9], (1,), k).reshape(1, 1)     # (1, 1)
    return dict(wih0=wih0, whh0=whh0, b0=b0,
                wih1=wih1, whh1=whh1, b1=b1,
                wfc=wfc, bfc=bfc)


def ref_forward(x, p):
    """Pure-JAX reference of the PyTorch forward (for correctness check)."""
    B, T, _ = x.shape
    h0 = jnp.zeros((B, H)); c0 = jnp.zeros((B, H))
    h1 = jnp.zeros((B, H)); c1 = jnp.zeros((B, H))

    def cell(xt, h, c, wih, whh, b):
        g = xt @ wih + h @ whh + b
        i = jax.nn.sigmoid(g[:, :H])
        f = jax.nn.sigmoid(g[:, H:2 * H])
        gg = jnp.tanh(g[:, 2 * H:3 * H])
        o = jax.nn.sigmoid(g[:, 3 * H:])
        c = f * c + i * gg
        h = o * jnp.tanh(c)
        return h, c

    for t in range(T):
        xt = x[:, t, :]
        h0, c0 = cell(xt, h0, c0, p["wih0"], p["whh0"], p["b0"])
        h1, c1 = cell(h0, h1, c1, p["wih1"], p["whh1"], p["b1"])
    return jnp.squeeze(h1 @ p["wfc"].T + p["bfc"])


if __name__ == "__main__":
    key = jax.random.PRNGKey(0)
    kx, kp = jax.random.split(key)

    B, T = 2, 8
    x = jax.random.normal(kx, (B, T, 1), dtype=jnp.float32)
    params = init_params(kp)

    ref = jax.block_until_ready(ref_forward(x, params))

    # f32 MXU path: must match the pure-JAX reference tightly.
    out_f32 = jax.block_until_ready(rul_forward(x, params))
    assert out_f32.shape == (B,), f"unexpected output shape {out_f32.shape}"
    np.testing.assert_allclose(np.asarray(out_f32), np.asarray(ref),
                               rtol=2e-5, atol=2e-5)

    # bf16-on-MXU path (recommended on v5e; cell math stays f32).
    out_bf16 = jax.block_until_ready(
        rul_forward(x, params, mxu_dtype=jnp.bfloat16))
    np.testing.assert_allclose(np.asarray(out_bf16), np.asarray(ref),
                               rtol=5e-2, atol=5e-2)

    print("KERNEL_OK")
</pallas_src>

<mosaic_0001>
module attributes {stable_mosaic.version = 11 : i64} {
  func.func @rul_kernel(%arg0: i32, %arg1: memref<8x8x1xf32, #tpu.memory_space<vmem>>, %arg2: memref<1x128xf32, #tpu.memory_space<vmem>>, %arg3: memref<1x128xf32, #tpu.memory_space<vmem>>, %arg4: memref<32x128xf32, #tpu.memory_space<vmem>>, %arg5: memref<32x128xf32, #tpu.memory_space<vmem>>, %arg6: memref<32x128xf32, #tpu.memory_space<vmem>>, %arg7: memref<1x128xf32, #tpu.memory_space<vmem>>, %arg8: memref<1x32xf32, #tpu.memory_space<vmem>>, %arg9: memref<1x1xf32, #tpu.memory_space<vmem>>, %arg10: memref<8x1xf32, #tpu.memory_space<vmem>>) attributes {dimension_semantics = [#tpu.dimension_semantics<parallel>], iteration_bounds = array<i64: 1>, scalar_prefetch = 0 : i64, scratch_operands = 0 : i64, tpu.core_type = #tpu.core_type<tc>, window_params = [{transform_indices = @transform_0, window_bounds = array<i64: 8, 8, 1>}, {pipeline_mode = #tpu.pipeline_mode<synchronous>, transform_indices = @transform_1, window_bounds = array<i64: 1, 128>}, {pipeline_mode = #tpu.pipeline_mode<synchronous>, transform_indices = @transform_2, window_bounds = array<i64: 1, 128>}, {pipeline_mode = #tpu.pipeline_mode<synchronous>, transform_indices = @transform_3, window_bounds = array<i64: 32, 128>}, {pipeline_mode = #tpu.pipeline_mode<synchronous>, transform_indices = @transform_4, window_bounds = array<i64: 32, 128>}, {pipeline_mode = #tpu.pipeline_mode<synchronous>, transform_indices = @transform_5, window_bounds = array<i64: 32, 128>}, {pipeline_mode = #tpu.pipeline_mode<synchronous>, transform_indices = @transform_6, window_bounds = array<i64: 1, 128>}, {pipeline_mode = #tpu.pipeline_mode<synchronous>, transform_indices = @transform_7, window_bounds = array<i64: 1, 32>}, {pipeline_mode = #tpu.pipeline_mode<synchronous>, transform_indices = @transform_8, window_bounds = array<i64: 1, 1>}, {transform_indices = @transform_9, window_bounds = array<i64: 8, 1>}]} {
    %c0 = arith.constant 0 : index
    %c0_0 = arith.constant 0 : index
    %0 = vector.load %arg2[%c0, %c0_0] : memref<1x128xf32, #tpu.memory_space<vmem>>, vector<1x128xf32>
    %c0_1 = arith.constant 0 : index
    %c0_2 = arith.constant 0 : index
    %1 = vector.load %arg3[%c0_1, %c0_2] : memref<1x128xf32, #tpu.memory_space<vmem>>, vector<1x128xf32>
    %c0_3 = arith.constant 0 : index
    %c0_4 = arith.constant 0 : index
    %2 = vector.load %arg4[%c0_3, %c0_4] : memref<32x128xf32, #tpu.memory_space<vmem>>, vector<32x128xf32>
    %c0_5 = arith.constant 0 : index
    %c0_6 = arith.constant 0 : index
    %3 = vector.load %arg5[%c0_5, %c0_6] : memref<32x128xf32, #tpu.memory_space<vmem>>, vector<32x128xf32>
    %c0_7 = arith.constant 0 : index
    %c0_8 = arith.constant 0 : index
    %4 = vector.load %arg6[%c0_7, %c0_8] : memref<32x128xf32, #tpu.memory_space<vmem>>, vector<32x128xf32>
    %c0_9 = arith.constant 0 : index
    %c0_10 = arith.constant 0 : index
    %5 = vector.load %arg7[%c0_9, %c0_10] : memref<1x128xf32, #tpu.memory_space<vmem>>, vector<1x128xf32>
    %6 = tpu.iota {dimensions = array<i32: 1>} : vector<1x128xi32>
    %c64_i32 = arith.constant 64 : i32
    %7 = vector.broadcast %c64_i32 : i32 to vector<1x128xi32>
    %8 = arith.cmpi sge, %6, %7 : vector<1x128xi32>
    %c96_i32 = arith.constant 96 : i32
    %9 = vector.broadcast %c96_i32 : i32 to vector<1x128xi32>
    %10 = arith.cmpi slt, %6, %9 : vector<1x128xi32>
    %11 = arith.andi %8, %10 : vector<1x128xi1>
    %cst = arith.constant 1.000000e+00 : f32
    %cst_11 = arith.constant 5.000000e-01 : f32
    %12 = vector.broadcast %cst : f32 to vector<1x128xf32>
    %13 = vector.broadcast %cst_11 : f32 to vector<1x128xf32>
    %14 = arith.select %11, %12, %13 : vector<1x128xi1>, vector<1x128xf32>
    %cst_12 = arith.constant 0.000000e+00 : f32
    %cst_13 = arith.constant 5.000000e-01 : f32
    %15 = vector.broadcast %cst_12 : f32 to vector<1x128xf32>
    %16 = vector.broadcast %cst_13 : f32 to vector<1x128xf32>
    %17 = arith.select %11, %15, %16 : vector<1x128xi1>, vector<1x128xf32>
    %cst_14 = arith.constant 0.000000e+00 : f32
    %18 = vector.broadcast %cst_14 : f32 to vector<8x32xf32>
    %c0_i32 = arith.constant 0 : i32
    %cst_15 = arith.constant dense<0.000000e+00> : vector<8x128xf32>
    %19 = tpu.matmul %18, %4, %cst_15 {dimension_numbers = #tpu.dot_dimension_numbers<[1], [0], [0], [1], [0, 0, 1, 1], [], []>} : vector<8x32xf32>, vector<32x128xf32>, vector<8x128xf32> -> vector<8x128xf32>
    %20 = vector.broadcast %5 : vector<1x128xf32> to vector<8x128xf32>
    %21 = arith.addf %19, %20 : vector<8x128xf32>
    %22 = arith.index_cast %c0_i32 : i32 to index
    %c0_16 = arith.constant 0 : index
    %c0_17 = arith.constant 0 : index
    %23 = vector.load %arg1[%22, %c0_16, %c0_17] : memref<8x8x1xf32, #tpu.memory_space<vmem>>, vector<1x8x1xf32>
    %24 = vector.shape_cast %23 : vector<1x8x1xf32> to vector<8x1xf32>
    %25 = vector.broadcast %24 : vector<8x1xf32> to vector<8x128xf32>
    %26 = vector.broadcast %0 : vector<1x128xf32> to vector<8x128xf32>
    %27 = arith.mulf %25, %26 : vector<8x128xf32>
    %28 = vector.broadcast %1 : vector<1x128xf32> to vector<8x128xf32>
    %29 = arith.addf %27, %28 : vector<8x128xf32>
    %cst_18 = arith.constant dense<0.000000e+00> : vector<8x128xf32>
    %30 = tpu.matmul %18, %2, %cst_18 {dimension_numbers = #tpu.dot_dimension_numbers<[1], [0], [0], [1], [0, 0, 1, 1], [], []>} : vector<8x32xf32>, vector<32x128xf32>, vector<8x128xf32> -> vector<8x128xf32>
    %31 = arith.addf %29, %30 : vector<8x128xf32>
    %32 = vector.broadcast %14 : vector<1x128xf32> to vector<8x128xf32>
    %33 = arith.mulf %31, %32 : vector<8x128xf32>
    %34 = math.tanh %33 : vector<8x128xf32>
    %35 = vector.broadcast %14 : vector<1x128xf32> to vector<8x128xf32>
    %36 = arith.mulf %34, %35 : vector<8x128xf32>
    %37 = vector.broadcast %17 : vector<1x128xf32> to vector<8x128xf32>
    %38 = arith.addf %36, %37 : vector<8x128xf32>
    %39 = vector.extract_strided_slice %38 {offsets = [0, 0], sizes = [8, 32], strides = [1, 1]} : vector<8x128xf32> to vector<8x32xf32>
    %40 = vector.extract_strided_slice %38 {offsets = [0, 32], sizes = [8, 32], strides = [1, 1]} : vector<8x128xf32> to vector<8x32xf32>
    %41 = vector.extract_strided_slice %38 {offsets = [0, 64], sizes = [8, 32], strides = [1, 1]} : vector<8x128xf32> to vector<8x32xf32>
    %42 = vector.extract_strided_slice %38 {offsets = [0, 96], sizes = [8, 32], strides = [1, 1]} : vector<8x128xf32> to vector<8x32xf32>
    %43 = arith.mulf %40, %18 : vector<8x32xf32>
    %44 = arith.mulf %39, %41 : vector<8x32xf32>
    %45 = arith.addf %43, %44 : vector<8x32xf32>
    %46 = math.tanh %45 : vector<8x32xf32>
    %47 = arith.mulf %42, %46 : vector<8x32xf32>
    %cst_19 = arith.constant dense<0.000000e+00> : vector<8x128xf32>
    %48 = tpu.matmul %47, %3, %cst_19 {dimension_numbers = #tpu.dot_dimension_numbers<[1], [0], [0], [1], [0, 0, 1, 1], [], []>} : vector<8x32xf32>, vector<32x128xf32>, vector<8x128xf32> -> vector<8x128xf32>
    %49 = arith.addf %21, %48 : vector<8x128xf32>
    %50 = vector.broadcast %14 : vector<1x128xf32> to vector<8x128xf32>
    %51 = arith.mulf %49, %50 : vector<8x128xf32>
    %52 = math.tanh %51 : vector<8x128xf32>
    %53 = vector.broadcast %14 : vector<1x128xf32> to vector<8x128xf32>
    %54 = arith.mulf %52, %53 : vector<8x128xf32>
    %55 = vector.broadcast %17 : vector<1x128xf32> to vector<8x128xf32>
    %56 = arith.addf %54, %55 : vector<8x128xf32>
    %57 = vector.extract_strided_slice %56 {offsets = [0, 0], sizes = [8, 32], strides = [1, 1]} : vector<8x128xf32> to vector<8x32xf32>
    %58 = vector.extract_strided_slice %56 {offsets = [0, 32], sizes = [8, 32], strides = [1, 1]} : vector<8x128xf32> to vector<8x32xf32>
    %59 = vector.extract_strided_slice %56 {offsets = [0, 64], sizes = [8, 32], strides = [1, 1]} : vector<8x128xf32> to vector<8x32xf32>
    %60 = vector.extract_strided_slice %56 {offsets = [0, 96], sizes = [8, 32], strides = [1, 1]} : vector<8x128xf32> to vector<8x32xf32>
    %61 = arith.mulf %58, %18 : vector<8x32xf32>
    %62 = arith.mulf %57, %59 : vector<8x32xf32>
    %63 = arith.addf %61, %62 : vector<8x32xf32>
    %64 = math.tanh %63 : vector<8x32xf32>
    %65 = arith.mulf %60, %64 : vector<8x32xf32>
    %c1_i32 = arith.constant 1 : i32
    %cst_20 = arith.constant dense<0.000000e+00> : vector<8x128xf32>
    %66 = tpu.matmul %65, %4, %cst_20 {dimension_numbers = #tpu.dot_dimension_numbers<[1], [0], [0], [1], [0, 0, 1, 1], [], []>} : vector<8x32xf32>, vector<32x128xf32>, vector<8x128xf32> -> vector<8x128xf32>
    %67 = vector.broadcast %5 : vector<1x128xf32> to vector<8x128xf32>
    %68 = arith.addf %66, %67 : vector<8x128xf32>
    %69 = arith.index_cast %c1_i32 : i32 to index
    %c0_21 = arith.constant 0 : index
    %c0_22 = arith.constant 0 : index
    %70 = vector.load %arg1[%69, %c0_21, %c0_22] : memref<8x8x1xf32, #tpu.memory_space<vmem>>, vector<1x8x1xf32>
    %71 = vector.shape_cast %70 : vector<1x8x1xf32> to vector<8x1xf32>
    %72 = vector.broadcast %71 : vector<8x1xf32> to vector<8x128xf32>
    %73 = vector.broadcast %0 : vector<1x128xf32> to vector<8x128xf32>
    %74 = arith.mulf %72, %73 : vector<8x128xf32>
    %75 = vector.broadcast %1 : vector<1x128xf32> to vector<8x128xf32>
    %76 = arith.addf %74, %75 : vector<8x128xf32>
    %cst_23 = arith.constant dense<0.000000e+00> : vector<8x128xf32>
    %77 = tpu.matmul %47, %2, %cst_23 {dimension_numbers = #tpu.dot_dimension_numbers<[1], [0], [0], [1], [0, 0, 1, 1], [], []>} : vector<8x32xf32>, vector<32x128xf32>, vector<8x128xf32> -> vector<8x128xf32>
    %78 = arith.addf %76, %77 : vector<8x128xf32>
    %79 = vector.broadcast %14 : vector<1x128xf32> to vector<8x128xf32>
    %80 = arith.mulf %78, %79 : vector<8x128xf32>
    %81 = math.tanh %80 : vector<8x128xf32>
    %82 = vector.broadcast %14 : vector<1x128xf32> to vector<8x128xf32>
    %83 = arith.mulf %81, %82 : vector<8x128xf32>
    %84 = vector.broadcast %17 : vector<1x128xf32> to vector<8x128xf32>
    %85 = arith.addf %83, %84 : vector<8x128xf32>
    %86 = vector.extract_strided_slice %85 {offsets = [0, 0], sizes = [8, 32], strides = [1, 1]} : vector<8x128xf32> to vector<8x32xf32>
    %87 = vector.extract_strided_slice %85 {offsets = [0, 32], sizes = [8, 32], strides = [1, 1]} : vector<8x128xf32> to vector<8x32xf32>
    %88 = vector.extract_strided_slice %85 {offsets = [0, 64], sizes = [8, 32], strides = [1, 1]} : vector<8x128xf32> to vector<8x32xf32>
    %89 = vector.extract_strided_slice %85 {offsets = [0, 96], sizes = [8, 32], strides = [1, 1]} : vector<8x128xf32> to vector<8x32xf32>
    %90 = arith.mulf %87, %45 : vector<8x32xf32>
    %91 = arith.mulf %86, %88 : vector<8x32xf32>
    %92 = arith.addf %90, %91 : vector<8x32xf32>
    %93 = math.tanh %92 : vector<8x32xf32>
    %94 = arith.mulf %89, %93 : vector<8x32xf32>
    %cst_24 = arith.constant dense<0.000000e+00> : vector<8x128xf32>
    %95 = tpu.matmul %94, %3, %cst_24 {dimension_numbers = #tpu.dot_dimension_numbers<[1], [0], [0], [1], [0, 0, 1, 1], [], []>} : vector<8x32xf32>, vector<32x128xf32>, vector<8x128xf32> -> vector<8x128xf32>
    %96 = arith.addf %68, %95 : vector<8x128xf32>
    %97 = vector.broadcast %14 : vector<1x128xf32> to vector<8x128xf32>
    %98 = arith.mulf %96, %97 : vector<8x128xf32>
    %99 = math.tanh %98 : vector<8x128xf32>
    %100 = vector.broadcast %14 : vector<1x128xf32> to vector<8x128xf32>
    %101 = arith.mulf %99, %100 : vector<8x128xf32>
    %102 = vector.broadcast %17 : vector<1x128xf32> to vector<8x128xf32>
    %103 = arith.addf %101, %102 : vector<8x128xf32>
    %104 = vector.extract_strided_slice %103 {offsets = [0, 0], sizes = [8, 32], strides = [1, 1]} : vector<8x128xf32> to vector<8x32xf32>
    %105 = vector.extract_strided_slice %103 {offsets = [0, 32], sizes = [8, 32], strides = [1, 1]} : vector<8x128xf32> to vector<8x32xf32>
    %106 = vector.extract_strided_slice %103 {offsets = [0, 64], sizes = [8, 32], strides = [1, 1]} : vector<8x128xf32> to vector<8x32xf32>
    %107 = vector.extract_strided_slice %103 {offsets = [0, 96], sizes = [8, 32], strides = [1, 1]} : vector<8x128xf32> to vector<8x32xf32>
    %108 = arith.mulf %105, %63 : vector<8x32xf32>
    %109 = arith.mulf %104, %106 : vector<8x32xf32>
    %110 = arith.addf %108, %109 : vector<8x32xf32>
    %111 = math.tanh %110 : vector<8x32xf32>
    %112 = arith.mulf %107, %111 : vector<8x32xf32>
    %c2_i32 = arith.constant 2 : i32
    %cst_25 = arith.constant dense<0.000000e+00> : vector<8x128xf32>
    %113 = tpu.matmul %112, %4, %cst_25 {dimension_numbers = #tpu.dot_dimension_numbers<[1], [0], [0], [1], [0, 0, 1, 1], [], []>} : vector<8x32xf32>, vector<32x128xf32>, vector<8x128xf32> -> vector<8x128xf32>
    %114 = vector.broadcast %5 : vector<1x128xf32> to vector<8x128xf32>
    %115 = arith.addf %113, %114 : vector<8x128xf32>
    %116 = arith.index_cast %c2_i32 : i32 to index
    %c0_26 = arith.constant 0 : index
    %c0_27 = arith.constant 0 : index
    %117 = vector.load %arg1[%116, %c0_26, %c0_27] : memref<8x8x1xf32, #tpu.memory_space<vmem>>, vector<1x8x1xf32>
    %118 = vector.shape_cast %117 : vector<1x8x1xf32> to vector<8x1xf32>
    %119 = vector.broadcast %118 : vector<8x1xf32> to vector<8x128xf32>
    %120 = vector.broadcast %0 : vector<1x128xf32> to vector<8x128xf32>
    %121 = arith.mulf %119, %120 : vector<8x128xf32>
    %122 = vector.broadcast %1 : vector<1x128xf32> to vector<8x128xf32>
    %123 = arith.addf %121, %122 : vector<8x128xf32>
    %cst_28 = arith.constant dense<0.000000e+00> : vector<8x128xf32>
    %124 = tpu.matmul %94, %2, %cst_28 {dimension_numbers = #tpu.dot_dimension_numbers<[1], [0], [0], [1], [0, 0, 1, 1], [], []>} : vector<8x32xf32>, vector<32x128xf32>, vector<8x128xf32> -> vector<8x128xf32>
    %125 = arith.addf %123, %124 : vector<8x128xf32>
    %126 = vector.broadcast %14 : vector<1x128xf32> to vector<8x128xf32>
    %127 = arith.mulf %125, %126 : vector<8x128xf32>
    %128 = math.tanh %127 : vector<8x128xf32>
    %129 = vector.broadcast %14 : vector<1x128xf32> to vector<8x128xf32>
    %130 = arith.mulf %128, %129 : vector<8x128xf32>
    %131 = vector.broadcast %17 : vector<1x128xf32> to vector<8x128xf32>
    %132 = arith.addf %130, %131 : vector<8x128xf32>
    %133 = vector.extract_strided_slice %132 {offsets = [0, 0], sizes = [8, 32], strides = [1, 1]} : vector<8x128xf32> to vector<8x32xf32>
    %134 = vector.extract_strided_slice %132 {offsets = [0, 32], sizes = [8, 32], strides = [1, 1]} : vector<8x128xf32> to vector<8x32xf32>
    %135 = vector.extract_strided_slice %132 {offsets = [0, 64], sizes = [8, 32], strides = [1, 1]} : vector<8x128xf32> to vector<8x32xf32>
    %136 = vector.extract_strided_slice %132 {offsets = [0, 96], sizes = [8, 32], strides = [1, 1]} : vector<8x128xf32> to vector<8x32xf32>
    %137 = arith.mulf %134, %92 : vector<8x32xf32>
    %138 = arith.mulf %133, %135 : vector<8x32xf32>
    %139 = arith.addf %137, %138 : vector<8x32xf32>
    %140 = math.tanh %139 : vector<8x32xf32>
    %141 = arith.mulf %136, %140 : vector<8x32xf32>
    %cst_29 = arith.constant dense<0.000000e+00> : vector<8x128xf32>
    %142 = tpu.matmul %141, %3, %cst_29 {dimension_numbers = #tpu.dot_dimension_numbers<[1], [0], [0], [1], [0, 0, 1, 1], [], []>} : vector<8x32xf32>, vector<32x128xf32>, vector<8x128xf32> -> vector<8x128xf32>
    %143 = arith.addf %115, %142 : vector<8x128xf32>
    %144 = vector.broadcast %14 : vector<1x128xf32> to vector<8x128xf32>
    %145 = arith.mulf %143, %144 : vector<8x128xf32>
    %146 = math.tanh %145 : vector<8x128xf32>
    %147 = vector.broadcast %14 : vector<1x128xf32> to vector<8x128xf32>
    %148 = arith.mulf %146, %147 : vector<8x128xf32>
    %149 = vector.broadcast %17 : vector<1x128xf32> to vector<8x128xf32>
    %150 = arith.addf %148, %149 : vector<8x128xf32>
    %151 = vector.extract_strided_slice %150 {offsets = [0, 0], sizes = [8, 32], strides = [1, 1]} : vector<8x128xf32> to vector<8x32xf32>
    %152 = vector.extract_strided_slice %150 {offsets = [0, 32], sizes = [8, 32], strides = [1, 1]} : vector<8x128xf32> to vector<8x32xf32>
    %153 = vector.extract_strided_slice %150 {offsets = [0, 64], sizes = [8, 32], strides = [1, 1]} : vector<8x128xf32> to vector<8x32xf32>
    %154 = vector.extract_strided_slice %150 {offsets = [0, 96], sizes = [8, 32], strides = [1, 1]} : vector<8x128xf32> to vector<8x32xf32>
    %155 = arith.mulf %152, %110 : vector<8x32xf32>
    %156 = arith.mulf %151, %153 : vector<8x32xf32>
    %157 = arith.addf %155, %156 : vector<8x32xf32>
    %158 = math.tanh %157 : vector<8x32xf32>
    %159 = arith.mulf %154, %158 : vector<8x32xf32>
    %c3_i32 = arith.constant 3 : i32
    %cst_30 = arith.constant dense<0.000000e+00> : vector<8x128xf32>
    %160 = tpu.matmul %159, %4, %cst_30 {dimension_numbers = #tpu.dot_dimension_numbers<[1], [0], [0], [1], [0, 0, 1, 1], [], []>} : vector<8x32xf32>, vector<32x128xf32>, vector<8x128xf32> -> vector<8x128xf32>
    %161 = vector.broadcast %5 : vector<1x128xf32> to vector<8x128xf32>
    %162 = arith.addf %160, %161 : vector<8x128xf32>
    %163 = arith.index_cast %c3_i32 : i32 to index
    %c0_31 = arith.constant 0 : index
    %c0_32 = arith.constant 0 : index
    %164 = vector.load %arg1[%163, %c0_31, %c0_32] : memref<8x8x1xf32, #tpu.memory_space<vmem>>, vector<1x8x1xf32>
    %165 = vector.shape_cast %164 : vector<1x8x1xf32> to vector<8x1xf32>
    %166 = vector.broadcast %165 : vector<8x1xf32> to vector<8x128xf32>
    %167 = vector.broadcast %0 : vector<1x128xf32> to vector<8x128xf32>
    %168 = arith.mulf %166, %167 : vector<8x128xf32>
    %169 = vector.broadcast %1 : vector<1x128xf32> to vector<8x128xf32>
    %170 = arith.addf %168, %169 : vector<8x128xf32>
    %cst_33 = arith.constant dense<0.000000e+00> : vector<8x128xf32>
    %171 = tpu.matmul %141, %2, %cst_33 {dimension_numbers = #tpu.dot_dimension_numbers<[1], [0], [0], [1], [0, 0, 1, 1], [], []>} : vector<8x32xf32>, vector<32x128xf32>, vector<8x128xf32> -> vector<8x128xf32>
    %172 = arith.addf %170, %171 : vector<8x128xf32>
    %173 = vector.broadcast %14 : vector<1x128xf32> to vector<8x128xf32>
    %174 = arith.mulf %172, %173 : vector<8x128xf32>
    %175 = math.tanh %174 : vector<8x128xf32>
    %176 = vector.broadcast %14 : vector<1x128xf32> to vector<8x128xf32>
    %177 = arith.mulf %175, %176 : vector<8x128xf32>
    %178 = vector.broadcast %17 : vector<1x128xf32> to vector<8x128xf32>
    %179 = arith.addf %177, %178 : vector<8x128xf32>
    %180 = vector.extract_strided_slice %179 {offsets = [0, 0], sizes = [8, 32], strides = [1, 1]} : vector<8x128xf32> to vector<8x32xf32>
    %181 = vector.extract_strided_slice %179 {offsets = [0, 32], sizes = [8, 32], strides = [1, 1]} : vector<8x128xf32> to vector<8x32xf32>
    %182 = vector.extract_strided_slice %179 {offsets = [0, 64], sizes = [8, 32], strides = [1, 1]} : vector<8x128xf32> to vector<8x32xf32>
    %183 = vector.extract_strided_slice %179 {offsets = [0, 96], sizes = [8, 32], strides = [1, 1]} : vector<8x128xf32> to vector<8x32xf32>
    %184 = arith.mulf %181, %139 : vector<8x32xf32>
    %185 = arith.mulf %180, %182 : vector<8x32xf32>
    %186 = arith.addf %184, %185 : vector<8x32xf32>
    %187 = math.tanh %186 : vector<8x32xf32>
    %188 = arith.mulf %183, %187 : vector<8x32xf32>
    %cst_34 = arith.constant dense<0.000000e+00> : vector<8x128xf32>
    %189 = tpu.matmul %188, %3, %cst_34 {dimension_numbers = #tpu.dot_dimension_numbers<[1], [0], [0], [1], [0, 0, 1, 1], [], []>} : vector<8x32xf32>, vector<32x128xf32>, vector<8x128xf32> -> vector<8x128xf32>
    %190 = arith.addf %162, %189 : vector<8x128xf32>
    %191 = vector.broadcast %14 : vector<1x128xf32> to vector<8x128xf32>
    %192 = arith.mulf %190, %191 : vector<8x128xf32>
    %193 = math.tanh %192 : vector<8x128xf32>
    %194 = vector.broadcast %14 : vector<1x128xf32> to vector<8x128xf32>
    %195 = arith.mulf %193, %194 : vector<8x128xf32>
    %196 = vector.broadcast %17 : vector<1x128xf32> to vector<8x128xf32>
    %197 = arith.addf %195, %196 : vector<8x128xf32>
    %198 = vector.extract_strided_slice %197 {offsets = [0, 0], sizes = [8, 32], strides = [1, 1]} : vector<8x128xf32> to vector<8x32xf32>
    %199 = vector.extract_strided_slice %197 {offsets = [0, 32], sizes = [8, 32], strides = [1, 1]} : vector<8x128xf32> to vector<8x32xf32>
    %200 = vector.extract_strided_slice %197 {offsets = [0, 64], sizes = [8, 32], strides = [1, 1]} : vector<8x128xf32> to vector<8x32xf32>
    %201 = vector.extract_strided_slice %197 {offsets = [0, 96], sizes = [8, 32], strides = [1, 1]} : vector<8x128xf32> to vector<8x32xf32>
    %202 = arith.mulf %199, %157 : vector<8x32xf32>
    %203 = arith.mulf %198, %200 : vector<8x32xf32>
    %204 = arith.addf %202, %203 : vector<8x32xf32>
    %205 = math.tanh %204 : vector<8x32xf32>
    %206 = arith.mulf %201, %205 : vector<8x32xf32>
    %c4_i32 = arith.constant 4 : i32
    %cst_35 = arith.constant dense<0.000000e+00> : vector<8x128xf32>
    %207 = tpu.matmul %206, %4, %cst_35 {dimension_numbers = #tpu.dot_dimension_numbers<[1], [0], [0], [1], [0, 0, 1, 1], [], []>} : vector<8x32xf32>, vector<32x128xf32>, vector<8x128xf32> -> vector<8x128xf32>
    %208 = vector.broadcast %5 : vector<1x128xf32> to vector<8x128xf32>
    %209 = arith.addf %207, %208 : vector<8x128xf32>
    %210 = arith.index_cast %c4_i32 : i32 to index
    %c0_36 = arith.constant 0 : index
    %c0_37 = arith.constant 0 : index
    %211 = vector.load %arg1[%210, %c0_36, %c0_37] : memref<8x8x1xf32, #tpu.memory_space<vmem>>, vector<1x8x1xf32>
    %212 = vector.shape_cast %211 : vector<1x8x1xf32> to vector<8x1xf32>
    %213 = vector.broadcast %212 : vector<8x1xf32> to vector<8x128xf32>
    %214 = vector.broadcast %0 : vector<1x128xf32> to vector<8x128xf32>
    %215 = arith.mulf %213, %214 : vector<8x128xf32>
    %216 = vector.broadcast %1 : vector<1x128xf32> to vector<8x128xf32>
    %217 = arith.addf %215, %216 : vector<8x128xf32>
    %cst_38 = arith.constant dense<0.000000e+00> : vector<8x128xf32>
    %218 = tpu.matmul %188, %2, %cst_38 {dimension_numbers = #tpu.dot_dimension_numbers<[1], [0], [0], [1], [0, 0, 1, 1], [], []>} : vector<8x32xf32>, vector<32x128xf32>, vector<8x128xf32> -> vector<8x128xf32>
    %219 = arith.addf %217, %218 : vector<8x128xf32>
    %220 = vector.broadcast %14 : vector<1x128xf32> to vector<8x128xf32>
    %221 = arith.mulf %219, %220 : vector<8x128xf32>
    %222 = math.tanh %221 : vector<8x128xf32>
    %223 = vector.broadcast %14 : vector<1x128xf32> to vector<8x128xf32>
    %224 = arith.mulf %222, %223 : vector<8x128xf32>
    %225 = vector.broadcast %17 : vector<1x128xf32> to vector<8x128xf32>
    %226 = arith.addf %224, %225 : vector<8x128xf32>
    %227 = vector.extract_strided_slice %226 {offsets = [0, 0], sizes = [8, 32], strides = [1, 1]} : vector<8x128xf32> to vector<8x32xf32>
    %228 = vector.extract_strided_slice %226 {offsets = [0, 32], sizes = [8, 32], strides = [1, 1]} : vector<8x128xf32> to vector<8x32xf32>
    %229 = vector.extract_strided_slice %226 {offsets = [0, 64], sizes = [8, 32], strides = [1, 1]} : vector<8x128xf32> to vector<8x32xf32>
    %230 = vector.extract_strided_slice %226 {offsets = [0, 96], sizes = [8, 32], strides = [1, 1]} : vector<8x128xf32> to vector<8x32xf32>
    %231 = arith.mulf %228, %186 : vector<8x32xf32>
    %232 = arith.mulf %227, %229 : vector<8x32xf32>
    %233 = arith.addf %231, %232 : vector<8x32xf32>
    %234 = math.tanh %233 : vector<8x32xf32>
    %235 = arith.mulf %230, %234 : vector<8x32xf32>
    %cst_39 = arith.constant dense<0.000000e+00> : vector<8x128xf32>
    %236 = tpu.matmul %235, %3, %cst_39 {dimension_numbers = #tpu.dot_dimension_numbers<[1], [0], [0], [1], [0, 0, 1, 1], [], []>} : vector<8x32xf32>, vector<32x128xf32>, vector<8x128xf32> -> vector<8x128xf32>
    %237 = arith.addf %209, %236 : vector<8x128xf32>
    %238 = vector.broadcast %14 : vector<1x128xf32> to vector<8x128xf32>
    %239 = arith.mulf %237, %238 : vector<8x128xf32>
    %240 = math.tanh %239 : vector<8x128xf32>
    %241 = vector.broadcast %14 : vector<1x128xf32> to vector<8x128xf32>
    %242 = arith.mulf %240, %241 : vector<8x128xf32>
    %243 = vector.broadcast %17 : vector<1x128xf32> to vector<8x128xf32>
    %244 = arith.addf %242, %243 : vector<8x128xf32>
    %245 = vector.extract_strided_slice %244 {offsets = [0, 0], sizes = [8, 32], strides = [1, 1]} : vector<8x128xf32> to vector<8x32xf32>
    %246 = vector.extract_strided_slice %244 {offsets = [0, 32], sizes = [8, 32], strides = [1, 1]} : vector<8x128xf32> to vector<8x32xf32>
    %247 = vector.extract_strided_slice %244 {offsets = [0, 64], sizes = [8, 32], strides = [1, 1]} : vector<8x128xf32> to vector<8x32xf32>
    %248 = vector.extract_strided_slice %244 {offsets = [0, 96], sizes = [8, 32], strides = [1, 1]} : vector<8x128xf32> to vector<8x32xf32>
    %249 = arith.mulf %246, %204 : vector<8x32xf32>
    %250 = arith.mulf %245, %247 : vector<8x32xf32>
    %251 = arith.addf %249, %250 : vector<8x32xf32>
    %252 = math.tanh %251 : vector<8x32xf32>
    %253 = arith.mulf %248, %252 : vector<8x32xf32>
    %c5_i32 = arith.constant 5 : i32
    %cst_40 = arith.constant dense<0.000000e+00> : vector<8x128xf32>
    %254 = tpu.matmul %253, %4, %cst_40 {dimension_numbers = #tpu.dot_dimension_numbers<[1], [0], [0], [1], [0, 0, 1, 1], [], []>} : vector<8x32xf32>, vector<32x128xf32>, vector<8x128xf32> -> vector<8x128xf32>
    %255 = vector.broadcast %5 : vector<1x128xf32> to vector<8x128xf32>
    %256 = arith.addf %254, %255 : vector<8x128xf32>
    %257 = arith.index_cast %c5_i32 : i32 to index
    %c0_41 = arith.constant 0 : index
    %c0_42 = arith.constant 0 : index
    %258 = vector.load %arg1[%257, %c0_41, %c0_42] : memref<8x8x1xf32, #tpu.memory_space<vmem>>, vector<1x8x1xf32>
    %259 = vector.shape_cast %258 : vector<1x8x1xf32> to vector<8x1xf32>
    %260 = vector.broadcast %259 : vector<8x1xf32> to vector<8x128xf32>
    %261 = vector.broadcast %0 : vector<1x128xf32> to vector<8x128xf32>
    %262 = arith.mulf %260, %261 : vector<8x128xf32>
    %263 = vector.broadcast %1 : vector<1x128xf32> to vector<8x128xf32>
    %264 = arith.addf %262, %263 : vector<8x128xf32>
    %cst_43 = arith.constant dense<0.000000e+00> : vector<8x128xf32>
    %265 = tpu.matmul %235, %2, %cst_43 {dimension_numbers = #tpu.dot_dimension_numbers<[1], [0], [0], [1], [0, 0, 1, 1], [], []>} : vector<8x32xf32>, vector<32x128xf32>, vector<8x128xf32> -> vector<8x128xf32>
    %266 = arith.addf %264, %265 : vector<8x128xf32>
    %267 = vector.broadcast %14 : vector<1x128xf32> to vector<8x128xf32>
    %268 = arith.mulf %266, %267 : vector<8x128xf32>
    %269 = math.tanh %268 : vector<8x128xf32>
    %270 = vector.broadcast %14 : vector<1x128xf32> to vector<8x128xf32>
    %271 = arith.mulf %269, %270 : vector<8x128xf32>
    %272 = vector.broadcast %17 : vector<1x128xf32> to vector<8x128xf32>
    %273 = arith.addf %271, %272 : vector<8x128xf32>
    %274 = vector.extract_strided_slice %273 {offsets = [0, 0], sizes = [8, 32], strides = [1, 1]} : vector<8x128xf32> to vector<8x32xf32>
    %275 = vector.extract_strided_slice %273 {offsets = [0, 32], sizes = [8, 32], strides = [1, 1]} : vector<8x128xf32> to vector<8x32xf32>
    %276 = vector.extract_strided_slice %273 {offsets = [0, 64], sizes = [8, 32], strides = [1, 1]} : vector<8x128xf32> to vector<8x32xf32>
    %277 = vector.extract_strided_slice %273 {offsets = [0, 96], sizes = [8, 32], strides = [1, 1]} : vector<8x128xf32> to vector<8x32xf32>
    %278 = arith.mulf %275, %233 : vector<8x32xf32>
    %279 = arith.mulf %274, %276 : vector<8x32xf32>
    %280 = arith.addf %278, %279 : vector<8x32xf32>
    %281 = math.tanh %280 : vector<8x32xf32>
    %282 = arith.mulf %277, %281 : vector<8x32xf32>
    %cst_44 = arith.constant dense<0.000000e+00> : vector<8x128xf32>
    %283 = tpu.matmul %282, %3, %cst_44 {dimension_numbers = #tpu.dot_dimension_numbers<[1], [0], [0], [1], [0, 0, 1, 1], [], []>} : vector<8x32xf32>, vector<32x128xf32>, vector<8x128xf32> -> vector<8x128xf32>
    %284 = arith.addf %256, %283 : vector<8x128xf32>
    %285 = vector.broadcast %14 : vector<1x128xf32> to vector<8x128xf32>
    %286 = arith.mulf %284, %285 : vector<8x128xf32>
    %287 = math.tanh %286 : vector<8x128xf32>
    %288 = vector.broadcast %14 : vector<1x128xf32> to vector<8x128xf32>
    %289 = arith.mulf %287, %288 : vector<8x128xf32>
    %290 = vector.broadcast %17 : vector<1x128xf32> to vector<8x128xf32>
    %291 = arith.addf %289, %290 : vector<8x128xf32>
    %292 = vector.extract_strided_slice %291 {offsets = [0, 0], sizes = [8, 32], strides = [1, 1]} : vector<8x128xf32> to vector<8x32xf32>
    %293 = vector.extract_strided_slice %291 {offsets = [0, 32], sizes = [8, 32], strides = [1, 1]} : vector<8x128xf32> to vector<8x32xf32>
    %294 = vector.extract_strided_slice %291 {offsets = [0, 64], sizes = [8, 32], strides = [1, 1]} : vector<8x128xf32> to vector<8x32xf32>
    %295 = vector.extract_strided_slice %291 {offsets = [0, 96], sizes = [8, 32], strides = [1, 1]} : vector<8x128xf32> to vector<8x32xf32>
    %296 = arith.mulf %293, %251 : vector<8x32xf32>
    %297 = arith.mulf %292, %294 : vector<8x32xf32>
    %298 = arith.addf %296, %297 : vector<8x32xf32>
    %299 = math.tanh %298 : vector<8x32xf32>
    %300 = arith.mulf %295, %299 : vector<8x32xf32>
    %c6_i32 = arith.constant 6 : i32
    %cst_45 = arith.constant dense<0.000000e+00> : vector<8x128xf32>
    %301 = tpu.matmul %300, %4, %cst_45 {dimension_numbers = #tpu.dot_dimension_numbers<[1], [0], [0], [1], [0, 0, 1, 1], [], []>} : vector<8x32xf32>, vector<32x128xf32>, vector<8x128xf32> -> vector<8x128xf32>
    %302 = vector.broadcast %5 : vector<1x128xf32> to vector<8x128xf32>
    %303 = arith.addf %301, %302 : vector<8x128xf32>
    %304 = arith.index_cast %c6_i32 : i32 to index
    %c0_46 = arith.constant 0 : index
    %c0_47 = arith.constant 0 : index
    %305 = vector.load %arg1[%304, %c0_46, %c0_47] : memref<8x8x1xf32, #tpu.memory_space<vmem>>, vector<1x8x1xf32>
    %306 = vector.shape_cast %305 : vector<1x8x1xf32> to vector<8x1xf32>
    %307 = vector.broadcast %306 : vector<8x1xf32> to vector<8x128xf32>
    %308 = vector.broadcast %0 : vector<1x128xf32> to vector<8x128xf32>
    %309 = arith.mulf %307, %308 : vector<8x128xf32>
    %310 = vector.broadcast %1 : vector<1x128xf32> to vector<8x128xf32>
    %311 = arith.addf %309, %310 : vector<8x128xf32>
    %cst_48 = arith.constant dense<0.000000e+00> : vector<8x128xf32>
    %312 = tpu.matmul %282, %2, %cst_48 {dimension_numbers = #tpu.dot_dimension_numbers<[1], [0], [0], [1], [0, 0, 1, 1], [], []>} : vector<8x32xf32>, vector<32x128xf32>, vector<8x128xf32> -> vector<8x128xf32>
    %313 = arith.addf %311, %312 : vector<8x128xf32>
    %314 = vector.broadcast %14 : vector<1x128xf32> to vector<8x128xf32>
    %315 = arith.mulf %313, %314 : vector<8x128xf32>
    %316 = math.tanh %315 : vector<8x128xf32>
    %317 = vector.broadcast %14 : vector<1x128xf32> to vector<8x128xf32>
    %318 = arith.mulf %316, %317 : vector<8x128xf32>
    %319 = vector.broadcast %17 : vector<1x128xf32> to vector<8x128xf32>
    %320 = arith.addf %318, %319 : vector<8x128xf32>
    %321 = vector.extract_strided_slice %320 {offsets = [0, 0], sizes = [8, 32], strides = [1, 1]} : vector<8x128xf32> to vector<8x32xf32>
    %322 = vector.extract_strided_slice %320 {offsets = [0, 32], sizes = [8, 32], strides = [1, 1]} : vector<8x128xf32> to vector<8x32xf32>
    %323 = vector.extract_strided_slice %320 {offsets = [0, 64], sizes = [8, 32], strides = [1, 1]} : vector<8x128xf32> to vector<8x32xf32>
    %324 = vector.extract_strided_slice %320 {offsets = [0, 96], sizes = [8, 32], strides = [1, 1]} : vector<8x128xf32> to vector<8x32xf32>
    %325 = arith.mulf %322, %280 : vector<8x32xf32>
    %326 = arith.mulf %321, %323 : vector<8x32xf32>
    %327 = arith.addf %325, %326 : vector<8x32xf32>
    %328 = math.tanh %327 : vector<8x32xf32>
    %329 = arith.mulf %324, %328 : vector<8x32xf32>
    %cst_49 = arith.constant dense<0.000000e+00> : vector<8x128xf32>
    %330 = tpu.matmul %329, %3, %cst_49 {dimension_numbers = #tpu.dot_dimension_numbers<[1], [0], [0], [1], [0, 0, 1, 1], [], []>} : vector<8x32xf32>, vector<32x128xf32>, vector<8x128xf32> -> vector<8x128xf32>
    %331 = arith.addf %303, %330 : vector<8x128xf32>
    %332 = vector.broadcast %14 : vector<1x128xf32> to vector<8x128xf32>
    %333 = arith.mulf %331, %332 : vector<8x128xf32>
    %334 = math.tanh %333 : vector<8x128xf32>
    %335 = vector.broadcast %14 : vector<1x128xf32> to vector<8x128xf32>
    %336 = arith.mulf %334, %335 : vector<8x128xf32>
    %337 = vector.broadcast %17 : vector<1x128xf32> to vector<8x128xf32>
    %338 = arith.addf %336, %337 : vector<8x128xf32>
    %339 = vector.extract_strided_slice %338 {offsets = [0, 0], sizes = [8, 32], strides = [1, 1]} : vector<8x128xf32> to vector<8x32xf32>
    %340 = vector.extract_strided_slice %338 {offsets = [0, 32], sizes = [8, 32], strides = [1, 1]} : vector<8x128xf32> to vector<8x32xf32>
    %341 = vector.extract_strided_slice %338 {offsets = [0, 64], sizes = [8, 32], strides = [1, 1]} : vector<8x128xf32> to vector<8x32xf32>
    %342 = vector.extract_strided_slice %338 {offsets = [0, 96], sizes = [8, 32], strides = [1, 1]} : vector<8x128xf32> to vector<8x32xf32>
    %343 = arith.mulf %340, %298 : vector<8x32xf32>
    %344 = arith.mulf %339, %341 : vector<8x32xf32>
    %345 = arith.addf %343, %344 : vector<8x32xf32>
    %346 = math.tanh %345 : vector<8x32xf32>
    %347 = arith.mulf %342, %346 : vector<8x32xf32>
    %c7_i32 = arith.constant 7 : i32
    %cst_50 = arith.constant dense<0.000000e+00> : vector<8x128xf32>
    %348 = tpu.matmul %347, %4, %cst_50 {dimension_numbers = #tpu.dot_dimension_numbers<[1], [0], [0], [1], [0, 0, 1, 1], [], []>} : vector<8x32xf32>, vector<32x128xf32>, vector<8x128xf32> -> vector<8x128xf32>
    %349 = vector.broadcast %5 : vector<1x128xf32> to vector<8x128xf32>
    %350 = arith.addf %348, %349 : vector<8x128xf32>
    %351 = arith.index_cast %c7_i32 : i32 to index
    %c0_51 = arith.constant 0 : index
    %c0_52 = arith.constant 0 : index
    %352 = vector.load %arg1[%351, %c0_51, %c0_52] : memref<8x8x1xf32, #tpu.memory_space<vmem>>, vector<1x8x1xf32>
    %353 = vector.shape_cast %352 : vector<1x8x1xf32> to vector<8x1xf32>
    %354 = vector.broadcast %353 : vector<8x1xf32> to vector<8x128xf32>
    %355 = vector.broadcast %0 : vector<1x128xf32> to vector<8x128xf32>
    %356 = arith.mulf %354, %355 : vector<8x128xf32>
    %357 = vector.broadcast %1 : vector<1x128xf32> to vector<8x128xf32>
    %358 = arith.addf %356, %357 : vector<8x128xf32>
    %cst_53 = arith.constant dense<0.000000e+00> : vector<8x128xf32>
    %359 = tpu.matmul %329, %2, %cst_53 {dimension_numbers = #tpu.dot_dimension_numbers<[1], [0], [0], [1], [0, 0, 1, 1], [], []>} : vector<8x32xf32>, vector<32x128xf32>, vector<8x128xf32> -> vector<8x128xf32>
    %360 = arith.addf %358, %359 : vector<8x128xf32>
    %361 = vector.broadcast %14 : vector<1x128xf32> to vector<8x128xf32>
    %362 = arith.mulf %360, %361 : vector<8x128xf32>
    %363 = math.tanh %362 : vector<8x128xf32>
    %364 = vector.broadcast %14 : vector<1x128xf32> to vector<8x128xf32>
    %365 = arith.mulf %363, %364 : vector<8x128xf32>
    %366 = vector.broadcast %17 : vector<1x128xf32> to vector<8x128xf32>
    %367 = arith.addf %365, %366 : vector<8x128xf32>
    %368 = vector.extract_strided_slice %367 {offsets = [0, 0], sizes = [8, 32], strides = [1, 1]} : vector<8x128xf32> to vector<8x32xf32>
    %369 = vector.extract_strided_slice %367 {offsets = [0, 32], sizes = [8, 32], strides = [1, 1]} : vector<8x128xf32> to vector<8x32xf32>
    %370 = vector.extract_strided_slice %367 {offsets = [0, 64], sizes = [8, 32], strides = [1, 1]} : vector<8x128xf32> to vector<8x32xf32>
    %371 = vector.extract_strided_slice %367 {offsets = [0, 96], sizes = [8, 32], strides = [1, 1]} : vector<8x128xf32> to vector<8x32xf32>
    %372 = arith.mulf %369, %327 : vector<8x32xf32>
    %373 = arith.mulf %368, %370 : vector<8x32xf32>
    %374 = arith.addf %372, %373 : vector<8x32xf32>
    %375 = math.tanh %374 : vector<8x32xf32>
    %376 = arith.mulf %371, %375 : vector<8x32xf32>
    %cst_54 = arith.constant dense<0.000000e+00> : vector<8x128xf32>
    %377 = tpu.matmul %376, %3, %cst_54 {dimension_numbers = #tpu.dot_dimension_numbers<[1], [0], [0], [1], [0, 0, 1, 1], [], []>} : vector<8x32xf32>, vector<32x128xf32>, vector<8x128xf32> -> vector<8x128xf32>
    %378 = arith.addf %350, %377 : vector<8x128xf32>
    %379 = vector.broadcast %14 : vector<1x128xf32> to vector<8x128xf32>
    %380 = arith.mulf %378, %379 : vector<8x128xf32>
    %381 = math.tanh %380 : vector<8x128xf32>
    %382 = vector.broadcast %14 : vector<1x128xf32> to vector<8x128xf32>
    %383 = arith.mulf %381, %382 : vector<8x128xf32>
    %384 = vector.broadcast %17 : vector<1x128xf32> to vector<8x128xf32>
    %385 = arith.addf %383, %384 : vector<8x128xf32>
    %386 = vector.extract_strided_slice %385 {offsets = [0, 0], sizes = [8, 32], strides = [1, 1]} : vector<8x128xf32> to vector<8x32xf32>
    %387 = vector.extract_strided_slice %385 {offsets = [0, 32], sizes = [8, 32], strides = [1, 1]} : vector<8x128xf32> to vector<8x32xf32>
    %388 = vector.extract_strided_slice %385 {offsets = [0, 64], sizes = [8, 32], strides = [1, 1]} : vector<8x128xf32> to vector<8x32xf32>
    %389 = vector.extract_strided_slice %385 {offsets = [0, 96], sizes = [8, 32], strides = [1, 1]} : vector<8x128xf32> to vector<8x32xf32>
    %390 = arith.mulf %387, %345 : vector<8x32xf32>
    %391 = arith.mulf %386, %388 : vector<8x32xf32>
    %392 = arith.addf %390, %391 : vector<8x32xf32>
    %393 = math.tanh %392 : vector<8x32xf32>
    %394 = arith.mulf %389, %393 : vector<8x32xf32>
    %c8_i32 = arith.constant 8 : i32
    %c0_55 = arith.constant 0 : index
    %c0_56 = arith.constant 0 : index
    %395 = vector.load %arg8[%c0_55, %c0_56] : memref<1x32xf32, #tpu.memory_space<vmem>>, vector<1x32xf32>
    %396 = vector.broadcast %395 : vector<1x32xf32> to vector<8x32xf32>
    %397 = arith.mulf %394, %396 : vector<8x32xf32>
    %cst_57 = arith.constant dense<0.000000e+00> : vector<8xf32>
    %398 = vector.multi_reduction <add>, %397, %cst_57 [1] : vector<8x32xf32> to vector<8xf32>
    %399 = vector.shape_cast %398 : vector<8xf32> to vector<8x1xf32>
    %c0_58 = arith.constant 0 : index
    %c0_59 = arith.constant 0 : index
    %400 = vector.load %arg9[%c0_58, %c0_59] : memref<1x1xf32, #tpu.memory_space<vmem>>, vector<1x1xf32>
    %401 = vector.broadcast %400 : vector<1x1xf32> to vector<8x1xf32>
    %402 = arith.addf %399, %401 : vector<8x1xf32>
    %c0_60 = arith.constant 0 : index
    %c0_61 = arith.constant 0 : index
    %403 = vector.load %arg10[%c0_60, %c0_61] : memref<8x1xf32, #tpu.memory_space<vmem>>, vector<8x1xf32>
    tpu.vector_store %arg10[%c0_60, %c0_61], %402 {strides = array<i32>} : memref<8x1xf32, #tpu.memory_space<vmem>>, vector<8x1xf32>,
    return
  }
  func.func @transform_0(%arg0: i32) -> (i32, i32, i32) {
    %c0_i32 = arith.constant 0 : i32
    %c0_i32_0 = arith.constant 0 : i32
    %c0_i32_1 = arith.constant 0 : i32
    return %c0_i32, %arg0, %c0_i32_0 : i32, i32, i32
  }
  func.func @transform_1(%arg0: i32) -> (i32, i32) {
    %c0_i32 = arith.constant 0 : i32
    %c0_i32_0 = arith.constant 0 : i32
    %c0_i32_1 = arith.constant 0 : i32
    return %c0_i32, %c0_i32_0 : i32, i32
  }
  func.func @transform_2(%arg0: i32) -> (i32, i32) {
    %c0_i32 = arith.constant 0 : i32
    %c0_i32_0 = arith.constant 0 : i32
    %c0_i32_1 = arith.constant 0 : i32
    return %c0_i32, %c0_i32_0 : i32, i32
  }
  func.func @transform_3(%arg0: i32) -> (i32, i32) {
    %c0_i32 = arith.constant 0 : i32
    %c0_i32_0 = arith.constant 0 : i32
    %c0_i32_1 = arith.constant 0 : i32
    return %c0_i32, %c0_i32_0 : i32, i32
  }
  func.func @transform_4(%arg0: i32) -> (i32, i32) {
    %c0_i32 = arith.constant 0 : i32
    %c0_i32_0 = arith.constant 0 : i32
    %c0_i32_1 = arith.constant 0 : i32
    return %c0_i32, %c0_i32_0 : i32, i32
  }
  func.func @transform_5(%arg0: i32) -> (i32, i32) {
    %c0_i32 = arith.constant 0 : i32
    %c0_i32_0 = arith.constant 0 : i32
    %c0_i32_1 = arith.constant 0 : i32
    return %c0_i32, %c0_i32_0 : i32, i32
  }
  func.func @transform_6(%arg0: i32) -> (i32, i32) {
    %c0_i32 = arith.constant 0 : i32
    %c0_i32_0 = arith.constant 0 : i32
    %c0_i32_1 = arith.constant 0 : i32
    return %c0_i32, %c0_i32_0 : i32, i32
  }
  func.func @transform_7(%arg0: i32) -> (i32, i32) {
    %c0_i32 = arith.constant 0 : i32
    %c0_i32_0 = arith.constant 0 : i32
    %c0_i32_1 = arith.constant 0 : i32
    return %c0_i32, %c0_i32_0 : i32, i32
  }
  func.func @transform_8(%arg0: i32) -> (i32, i32) {
    %c0_i32 = arith.constant 0 : i32
    %c0_i32_0 = arith.constant 0 : i32
    %c0_i32_1 = arith.constant 0 : i32
    return %c0_i32, %c0_i32_0 : i32, i32
  }
  func.func @transform_9(%arg0: i32) -> (i32, i32) {
    %c0_i32 = arith.constant 0 : i32
    %c0_i32_0 = arith.constant 0 : i32
    return %arg0, %c0_i32 : i32, i32
  }
}

</mosaic_0001>

<bundles_post_ra>
// kernel: tpu_custom_call.1
= control target key start
LH: loop header
LB: loop body
LE: loop exit
PB: predicated region body
PF: predicated region fallthrough
CT: control target
= control target key end

     0   :  { %s3499_s0 = inlined_call_operand.vmem [shape: f32[8,8,1], index: 0, kind: input, shape index: {}]   ;;  %s3500_s1 = inlined_call_operand.vmem [shape: f32[1,128], index: 1, kind: input, shape index: {}]   ;;  %s3501_s2 = inlined_call_operand.vmem [shape: f32[1,128], index: 2, kind: input, shape index: {}]   ;;  %s3502_s3 = inlined_call_operand.vmem [shape: f32[32,128], index: 3, kind: input, shape index: {}]   ;;  %s3503_s4 = inlined_call_operand.vmem [shape: f32[32,128], index: 4, kind: input, shape index: {}]   ;;  %s3504_s5 = inlined_call_operand.hbm [shape: f32[32,128], index: 5, kind: input, shape index: {}]   ;;  %s3505_s6 = inlined_call_operand.vmem [shape: f32[1,128], index: 6, kind: input, shape index: {}]   ;;  %s3506_s7 = inlined_call_operand.vmem [shape: f32[1,32], index: 7, kind: input, shape index: {}]   ;;  %s3507_s8 = inlined_call_operand.<no memory space> [shape: f32[1,1], index: 8, kind: input, shape index: {}]   ;;  %s3508_s9 = inlined_call_operand.vmem [shape: f32[8,1], index: 9, kind: output, shape index: {}]  }
   0x1   :  { %v14_v0 = vstv %s3507_s8 }
   0x2   :  { %15 = vst [vmem:[#allocation2] sm:$0x1] %v14_v0 }
   0x3   :  { %16 = vsyncpa [#allocation4], 0  ;;  %s2989_s11 = smov [#allocation3]   ;;  %s2965_s15 = scalar_lea.hbm %s3504_s5, 512 }
   0x4   :  { %s32_s12 = sshll.u32 %s2989_s11, 4  ;;  %p2966_p0 = scmp.ne.s32.totalorder %s3504_s5, %s2965_s15  ;;  %s33_s12 = int_to_ptr.vmem [resolvable:$true] %s32_s12 }
   0x5   :  { %p2969_p1 = scmp.lt.u32.totalorder %s2965_s15, %s3504_s5 }
   0x7   :  { %p2971_p2 = pnand %p2969_p1, %p2966_p0 }
   0x9   :  { %2974 = shalt.err (!%p2971_p2)
}
   0xa   :  { %s2975_s8 = scalar_lea.vmem %s33_s12, 512  ;;  %p2980_p4 = scmp.lt.s32.totalorder %s33_s12, %s33_s12 }
   0xb   :  { %p2976_p3 = scmp.ne.s32.totalorder %s33_s12, %s2975_s8  ;;  %p2981_p5 = scmp.lt.s32.totalorder %s2975_s8, %s2975_s8 }
   0xd   :  { %p2982_p6 = por %p2981_p5, %p2980_p4 }
   0xf   :  { %p2983_p7 = pnand %p2982_p6, %p2976_p3 }
  0x11   :  { %2986 = shalt.err (!%p2983_p7)
}
  0x12   :  { %s2990_s20 = smov 128   ;;  %s2991_s21 = smov 8  }
  0x13   :  { %38 = dma.hbm_to_vmem [thread:$0]  %s3504_s5, 512, %s33_s12, [#allocation4], %s2990_s20, %s2990_s20, %s2991_s21  }
  0x14   :  { %2987 = dma.done.wait [#allocation4], 512  }
  0x15   :  { %2988 = vsyncadd [#allocation4], 4294966784  ;;  %v2992_v1 = vmov 0.0|0.0   ;;  %vm2993_vm0 = vmmov 0   ;;  %v2994_v2 = vmov 0.0   ;;  %v2995_v3 = vmov 0  }
  0x16   :  { %2726 = vmatprep.subr.bf16.mxu1 %v2992_v1  ;;  %2475 = vmatprep.mubr.msk.f32.mxu1 %vm2993_vm0, %v2994_v2  ;;  %v50_v4 = vld [vmem:[%s3502_s3] sm:$0xff]  ;;  %v51_v5 = vld [vmem:[%s3502_s3 + $0x8] sm:$0xff]  ;;  %v52_v6 = vld [vmem:[%s3502_s3 + $0x10] sm:$0xff]  ;;  %v63_v11 = vlaneseq  ;;  %v2996_v18 = vmov 0.5   ;;  %vm76_vm4 = vcmask 261120   ;;  %s2999_s14 = smov 96  }
  0x17   :  { %2899 = vset.pattern.permute.xlu0 %v2995_v3  ;;  %2720 = vmatprep.subr.bf16.mxu0 %v2992_v1  ;;  %v3080_v7 = vpack.c.bf16 %v51_v5, %v50_v4  ;;  %v53_v8 = vld [vmem:[%s3502_s3 + $0x18] sm:$0xff]  ;;  %v150_v9 = vld [vmem:[%s3499_s0] sm:$0xff]  ;;  %v59_v34 = vld [vmem:[#allocation3 + $0x8] sm:$0xff]  ;;  %vm2295_vm5 = vcmask 7168  }
  0x18   :  { %2464 = vmatprep.mubr.msk.f32.mxu0 %vm2993_vm0, %v2994_v2  ;;  %2900 = vset.pattern.permute.xlu1 %v2995_v3  ;;  %v3089_v10 = vpack.c.bf16 %v53_v8, %v52_v6  ;;  %v3100_v13 = vld [vmem:[%s3500_s1] ss:$0 sm:$0xff]  ;;  %v64_v14 = vand.u32 127, %v63_v11  ;;  %s2997_s1 = smov 64   ;;  %v58_v33 = vld [vmem:[#allocation3] sm:$0xff]  ;;  %v60_v35 = vld [vmem:[#allocation3 + $0x10] sm:$0xff] }
  0x19   :  { %153 = vperm.xlu0 %2899, %v150_v9   ;;  %2728 = vmatpush3.bf16.msra.mxu1 %v3080_v7  ;;  %v3106_v16 = vld [vmem:[%s3501_s2] ss:$0 sm:$0xff]  ;;  %s2998_s2 = smov 32   ;;  %v3121_v36 = vpack.c.bf16 %v59_v34, %v58_v33  ;;  %v55_v40 = vld [vmem:[%s3503_s4 + $0x8] sm:$0xff]  ;;  %v56_v42 = vld [vmem:[%s3503_s4 + $0x10] sm:$0xff] }
  0x1a   :  { %2729 = vmatprep.subr.bf16.mxu1 %v2992_v1  ;;  %vm65_vm1 = vcmp.ge.s32.totalorder %v64_v14, 64  ;;  %vm66_vm2 = vcmp.lt.s32.totalorder %v64_v14, 96  ;;  %v61_v37 = vld [vmem:[#allocation3 + $0x18] sm:$0xff]  ;;  %v2307_v46 = vld [vmem:[%s3499_s0 + $0x8] sm:$0xff] }
  0x1b   :  { %vm67_vm3 = vmand %vm65_vm1, %vm66_vm2  ;;  %2722 = vmatpush3.bf16.msra.mxu0 %v3121_v36  ;;  %v3124_v38 = vpack.c.bf16 %v61_v37, %v60_v35  ;;  %v54_v39 = vld [vmem:[%s3503_s4] sm:$0xff]  ;;  %v57_v43 = vld [vmem:[%s3503_s4 + $0x18] sm:$0xff] }
  0x1c   :  { %v3109_v19 = vsel %vm67_vm3, 1.0, %v2996_v18  ;;  %v3112_v25 = vsel %vm67_vm3, 0.0, %v2996_v18  ;;  %2723 = vmatprep.subr.bf16.mxu0 %v2992_v1  ;;  %v3136_v41 = vpack.c.bf16 %v55_v40, %v54_v39  ;;  %v3150_v45 = vpack.c.bf16 %v57_v43, %v56_v42  ;;  %v3178_v50 = vld [vmem:[%s3505_s6] ss:$0 sm:$0xff] }
  0x1d   :  { %2731 = vmatpush3.bf16.msra.mxu1 %v3089_v10 }
  0x1e   :  { %2738 = vmatprep.subr.bf16.mxu1 %v2992_v1 }
  0x1f   :  { %2725 = vmatpush3.bf16.msra.mxu0 %v3124_v38 }
  0x20   :  { %2476 = vmatmul.mubr.f32.vlgmr.msra.gmra.mrb[0].mxu1 %v2994_v2  ;;  %2732 = vmatprep.subr.bf16.mxu0 %v2992_v1 }
  0x21   :  { %2497 = vmatprep.mubr.msk.f32.mxu1 %vm2993_vm0, %v2994_v2  ;;  %2740 = vmatpush3.bf16.msra.mxu1 %v3121_v36 }
  0x22   :  { %2741 = vmatprep.subr.bf16.mxu1 %v2992_v1  ;;  %2465 = vmatmul.mubr.f32.vlgmr.msra.gmra.mrb[0].mxu0 %v2994_v2 }
  0x23   :  { %2734 = vmatpush3.bf16.msra.mxu0 %v3136_v41  ;;  %2486 = vmatprep.mubr.msk.f32.mxu0 %vm2993_vm0, %v2994_v2 }
  0x24   :  { %2735 = vmatprep.subr.bf16.mxu0 %v2992_v1 }
  0x25   :  { %2743 = vmatpush3.bf16.msra.mxu1 %v3124_v38 }
  0x26   :  { %2750 = vmatprep.subr.bf16.mxu1 %v2992_v1 }
  0x27   :  { %2737 = vmatpush3.bf16.msra.mxu0 %v3150_v45 }
  0x28   :  { %2744 = vmatprep.subr.bf16.mxu0 %v2992_v1 }
  0x98   :  { %v154_v12 = vpop.permute.xlu0 %153 }
  0x99   :  { %v162_v15 = vmul.f32 %v3100_v13, %v154_v12 }
  0x9b   :  { %v169_v17 = vadd.f32 %v3106_v16, %v162_v15 }
  0xf3   :  { %v236_v20 = vpop.f32.mrb[0].mxu1 }
  0xf4   :  { %v240_v21 = vadd.f32 %v236_v20, %v169_v17  ;;  %v2477_v22 = vpop.f32.mrb[1].mxu1 }
  0xf6   :  { %v241_v23 = vmul.f32 %v240_v21, %v3109_v19 }
  0xf8   :  { %2901 = vtanh.f32 %v241_v23 }
 0x102   :  { %v2902_v24 = vpop.eup %2901 }
 0x103   :  { %v243_v26 = vmul.f32 %v2902_v24, %v3109_v19 }
 0x105   :  { %v244_v27 = vadd.f32 %v243_v26, %v3112_v25  ;;  %v2311_v26 = vld [vmem:[%s3499_s0 + $0x10] sm:$0xff] }
 0x107   :  { %247 = vrot.lane.b32.xlu0 %v244_v27, %s2997_s1  ;;  %v245_v30 = vmul.f32 0.0, %v244_v27 }
 0x179   :  { %v248_v28 = vpop.permute.xlu0 %247 }
 0x17a   :  { %v250_v29 = vmul.f32 %v248_v28, %v244_v27 }
 0x17c   :  { %252 = vrot.lane.b32.xlu1 %v250_v29, %s2998_s2 }
 0x1ee   :  { %v253_v31 = vpop.permute.xlu1 %252 }
 0x1ef   :  { %v3118_v32 = vadd.f32 %v253_v31, %v245_v30 }
 0x1f1   :  { %2903 = vtanh.f32 %v3118_v32 }
 0x1fb   :  { %v2904_v44 = vpop.eup %2903 }
 0x1fc   :  { %258 = vrot.lane.b32.xlu1 %v2904_v44, %s2997_s1 }
 0x200   :  { %438 = vperm.xlu1 %2900, %v2307_v46  }
 0x26e   :  { %v259_v47 = vpop.permute.xlu1 %258 }
 0x26f   :  { %v261_v48 = vmul.f32 %v259_v47, %v244_v27 }
 0x271   :  { %263 = vrot.lane.b32.xlu0 %v261_v48, %s2998_s2 }
 0x27f   :  { %v439_v51 = vpop.permute.xlu1 %438 }
 0x280   :  { %v441_v55 = vmul.f32 %v3100_v13, %v439_v51 }
 0x282   :  { %v442_v57 = vadd.f32 %v3106_v16, %v441_v55 }
 0x2e3   :  { %v264_v49 = vpop.permute.xlu0 %263 }
 0x2e4   :  { %2487 = vmatmul.mubr.msk.f32.vlgmr.msra.gmra.mrb[0].mxu0 %vm76_vm4, %v264_v49 }
 0x2e5   :  { %2746 = vmatpush3.bf16.msra.mxu0 %v3080_v7  ;;  %2508 = vmatprep.mubr.msk.f32.mxu0 %vm2993_vm0, %v2994_v2 }
 0x2e6   :  { %2747 = vmatprep.subr.bf16.mxu0 %v2992_v1 }
 0x2e9   :  { %2749 = vmatpush3.bf16.msra.mxu0 %v3089_v10 }
 0x2ea   :  { %2756 = vmatprep.subr.bf16.mxu0 %v2992_v1 }
 0x2ec   :  { %2509 = vmatmul.mubr.msk.f32.vlgmr.msra.gmra.mrb[2].mxu0 %vm76_vm4, %v264_v49 }
 0x2ed   :  { %2758 = vmatpush3.bf16.msra.mxu0 %v3121_v36  ;;  %2530 = vmatprep.mubr.msk.f32.mxu0 %vm2993_vm0, %v2994_v2 }
 0x2ee   :  { %2759 = vmatprep.subr.bf16.mxu0 %v2992_v1 }
 0x2f1   :  { %2761 = vmatpush3.bf16.msra.mxu0 %v3124_v38 }
 0x2f2   :  { %2768 = vmatprep.subr.bf16.mxu0 %v2992_v1 }
 0x3b7   :  { %v333_v52 = vpop.f32.mrb[0].mxu0 }
 0x3b8   :  { %v2864_v53 = vadd.f32 %v3178_v50, %v333_v52  ;;  %v2488_v54 = vpop.f32.mrb[1].mxu0 }
 0x3ba   :  { %v338_v56 = vmul.f32 %v2864_v53, %v3109_v19 }
 0x3bc   :  { %2905 = vtanh.f32 %v338_v56 }
 0x3bf   :  { %v509_v58 = vpop.f32.mrb[2].mxu0 }
 0x3c0   :  { %v513_v59 = vadd.f32 %v509_v58, %v442_v57  ;;  %v2510_v60 = vpop.f32.mrb[3].mxu0 }
 0x3c2   :  { %v514_v61 = vmul.f32 %v513_v59, %v3109_v19 }
 0x3c4   :  { %2907 = vtanh.f32 %v514_v61 }
 0x3c6   :  { %v2906_v62 = vpop.eup %2905 }
 0x3c7   :  { %v340_v63 = vmul.f32 %v2906_v62, %v3109_v19 }
 0x3c9   :  { %v341_v0 = vadd.f32 %v340_v63, %v3112_v25 }
 0x3cb   :  { %344 = vrot.lane.b32.xlu0 %v341_v0, %s2997_s1  ;;  %v342_v12 = vmul.f32 0.0, %v341_v0 }
 0x3ce   :  { %v2908_v3 = vpop.eup %2907 }
 0x3cf   :  { %v516_v4 = vmul.f32 %v2908_v3, %v3109_v19 }
 0x3d1   :  { %v517_v5 = vadd.f32 %v516_v4, %v3112_v25 }
 0x3d3   :  { %520 = vrot.lane.b32.xlu1 %v517_v5, %s2997_s1  ;;  %v518_v17 = vmul.f32 %v517_v5, %v3118_v32 }
 0x43d   :  { %v345_v6 = vpop.permute.xlu0 %344 }
 0x43e   :  { %v347_v8 = vmul.f32 %v345_v6, %v341_v0 }
 0x440   :  { %349 = vrot.lane.b32.xlu0 %v347_v8, %s2998_s2 }
 0x445   :  { %v521_v9 = vpop.permute.xlu1 %520 }
 0x446   :  { %v523_v11 = vmul.f32 %v521_v9, %v517_v5 }
 0x448   :  { %525 = vrot.lane.b32.xlu1 %v523_v11, %s2998_s2 }
 0x4b2   :  { %v350_v14 = vpop.permute.xlu0 %349 }
 0x4b3   :  { %v3193_v15 = vadd.f32 %v350_v14, %v342_v12 }
 0x4b5   :  { %2909 = vtanh.f32 %v3193_v15 }
 0x4ba   :  { %v526_v18 = vpop.permute.xlu1 %525 }
 0x4bb   :  { %v3197_v20 = vadd.f32 %v526_v18, %v518_v17 }
 0x4bd   :  { %2911 = vtanh.f32 %v3197_v20 }
 0x4bf   :  { %v2910_v21 = vpop.eup %2909 }
 0x4c0   :  { %355 = vrot.lane.b32.xlu0 %v2910_v21, %s2997_s1 }
 0x4c7   :  { %v2912_v22 = vpop.eup %2911 }
 0x4c8   :  { %531 = vrot.lane.b32.xlu1 %v2912_v22, %s2997_s1 }
 0x532   :  { %v356_v23 = vpop.permute.xlu0 %355 }
 0x533   :  { %v358_v24 = vmul.f32 %v356_v23, %v341_v0 }
 0x535   :  { %360 = vrot.lane.b32.xlu0 %v358_v24, %s2998_s2 }
 0x539   :  { %711 = vperm.xlu0 %2899, %v2311_v26  }
 0x53a   :  { %v532_v27 = vpop.permute.xlu1 %531 }
 0x53b   :  { %v534_v28 = vmul.f32 %v532_v27, %v517_v5  ;;  %v2315_v5 = vld [vmem:[%s3499_s0 + $0x18] sm:$0xff] }
 0x53d   :  { %536 = vrot.lane.b32.xlu1 %v534_v28, %s2998_s2 }
 0x5a7   :  { %v361_v29 = vpop.permute.xlu0 %360 }
 0x5a8   :  { %2498 = vmatmul.mubr.msk.f32.vlgmr.msra.gmra.mrb[2].mxu1 %vm76_vm4, %v361_v29 }
 0x5a9   :  { %2752 = vmatpush3.bf16.msra.mxu1 %v3136_v41  ;;  %2519 = vmatprep.mubr.msk.f32.mxu1 %vm2993_vm0, %v2994_v2 }
 0x5aa   :  { %2753 = vmatprep.subr.bf16.mxu1 %v2992_v1 }
 0x5ad   :  { %2755 = vmatpush3.bf16.msra.mxu1 %v3150_v45 }
 0x5ae   :  { %2762 = vmatprep.subr.bf16.mxu1 %v2992_v1 }
 0x5af   :  { %v537_v30 = vpop.permute.xlu1 %536 }
 0x5b0   :  { %2520 = vmatmul.mubr.msk.f32.vlgmr.msra.gmra.mrb[2].mxu1 %vm76_vm4, %v537_v30 }
 0x5b1   :  { %2764 = vmatpush3.bf16.msra.mxu1 %v3080_v7  ;;  %2541 = vmatprep.mubr.msk.f32.mxu1 %vm2993_vm0, %v2994_v2 }
 0x5b2   :  { %2765 = vmatprep.subr.bf16.mxu1 %v2992_v1 }
 0x5b5   :  { %2767 = vmatpush3.bf16.msra.mxu1 %v3089_v10 }
 0x5b6   :  { %2774 = vmatprep.subr.bf16.mxu1 %v2992_v1 }
 0x5b8   :  { %2542 = vmatmul.mubr.msk.f32.vlgmr.msra.gmra.mrb[4].mxu1 %vm76_vm4, %v537_v30  ;;  %v712_v31 = vpop.permute.xlu0 %711 }
 0x5b9   :  { %2776 = vmatpush3.bf16.msra.mxu1 %v3121_v36  ;;  %2563 = vmatprep.mubr.msk.f32.mxu1 %vm2993_vm0, %v2994_v2  ;;  %v714_v35 = vmul.f32 %v3100_v13, %v712_v31 }
 0x5ba   :  { %2777 = vmatprep.subr.bf16.mxu1 %v2992_v1 }
 0x5bb   :  { %v715_v39 = vadd.f32 %v3106_v16, %v714_v35 }
 0x5bd   :  { %2779 = vmatpush3.bf16.msra.mxu1 %v3124_v38 }
 0x5be   :  { %2786 = vmatprep.subr.bf16.mxu1 %v2992_v1 }
 0x683   :  { %v606_v32 = vpop.f32.mrb[2].mxu1 }
 0x684   :  { %v2865_v33 = vadd.f32 %v3178_v50, %v606_v32  ;;  %v2521_v34 = vpop.f32.mrb[3].mxu1 }
 0x686   :  { %v611_v37 = vmul.f32 %v2865_v33, %v3109_v19 }
 0x688   :  { %2913 = vtanh.f32 %v611_v37 }
 0x68b   :  { %v782_v40 = vpop.f32.mrb[4].mxu1 }
 0x68c   :  { %v786_v42 = vadd.f32 %v782_v40, %v715_v39  ;;  %v2543_v43 = vpop.f32.mrb[5].mxu1 }
 0x68e   :  { %v787_v44 = vmul.f32 %v786_v42, %v3109_v19 }
 0x690   :  { %2915 = vtanh.f32 %v787_v44 }
 0x692   :  { %v2914_v46 = vpop.eup %2913 }
 0x693   :  { %v613_v47 = vmul.f32 %v2914_v46, %v3109_v19 }
 0x695   :  { %v614_v48 = vadd.f32 %v613_v47, %v3112_v25 }
 0x697   :  { %617 = vrot.lane.b32.xlu1 %v614_v48, %s2997_s1  ;;  %v615_v57 = vmul.f32 %v614_v48, %v3193_v15 }
 0x69a   :  { %v2916_v49 = vpop.eup %2915 }
 0x69b   :  { %v789_v51 = vmul.f32 %v2916_v49, %v3109_v19 }
 0x69d   :  { %v790_v52 = vadd.f32 %v789_v51, %v3112_v25 }
 0x69f   :  { %793 = vrot.lane.b32.xlu0 %v790_v52, %s2997_s1  ;;  %v791_v60 = vmul.f32 %v790_v52, %v3197_v20 }
 0x709   :  { %v618_v53 = vpop.permute.xlu1 %617 }
 0x70a   :  { %v620_v54 = vmul.f32 %v618_v53, %v614_v48 }
 0x70c   :  { %622 = vrot.lane.b32.xlu1 %v620_v54, %s2998_s2 }
 0x711   :  { %v794_v55 = vpop.permute.xlu0 %793 }
 0x712   :  { %v796_v56 = vmul.f32 %v794_v55, %v790_v52 }
 0x714   :  { %798 = vrot.lane.b32.xlu0 %v796_v56, %s2998_s2 }
 0x77e   :  { %v623_v58 = vpop.permute.xlu1 %622 }
 0x77f   :  { %v3242_v59 = vadd.f32 %v623_v58, %v615_v57 }
 0x781   :  { %2917 = vtanh.f32 %v3242_v59 }
 0x786   :  { %v799_v61 = vpop.permute.xlu0 %798 }
 0x787   :  { %v3246_v62 = vadd.f32 %v799_v61, %v791_v60 }
 0x789   :  { %2919 = vtanh.f32 %v3246_v62 }
 0x78b   :  { %v2918_v63 = vpop.eup %2917 }
 0x78c   :  { %628 = vrot.lane.b32.xlu1 %v2918_v63, %s2997_s1 }
 0x793   :  { %v2920_v0 = vpop.eup %2919 }
 0x794   :  { %804 = vrot.lane.b32.xlu0 %v2920_v0, %s2997_s1 }
 0x7fe   :  { %v629_v3 = vpop.permute.xlu1 %628 }
 0x7ff   :  { %v631_v4 = vmul.f32 %v629_v3, %v614_v48 }
 0x801   :  { %633 = vrot.lane.b32.xlu1 %v631_v4, %s2998_s2 }
 0x805   :  { %984 = vperm.xlu1 %2900, %v2315_v5  }
 0x806   :  { %v805_v6 = vpop.permute.xlu0 %804 }
 0x807   :  { %v807_v8 = vmul.f32 %v805_v6, %v790_v52  ;;  %v2319_v52 = vld [vmem:[%s3499_s0 + $0x20] sm:$0xff] }
 0x809   :  { %809 = vrot.lane.b32.xlu0 %v807_v8, %s2998_s2 }
 0x873   :  { %v634_v9 = vpop.permute.xlu1 %633 }
 0x874   :  { %2531 = vmatmul.mubr.msk.f32.vlgmr.msra.gmra.mrb[4].mxu0 %vm76_vm4, %v634_v9 }
 0x875   :  { %2770 = vmatpush3.bf16.msra.mxu0 %v3136_v41  ;;  %2552 = vmatprep.mubr.msk.f32.mxu0 %vm2993_vm0, %v2994_v2 }
 0x876   :  { %2771 = vmatprep.subr.bf16.mxu0 %v2992_v1 }
 0x879   :  { %2773 = vmatpush3.bf16.msra.mxu0 %v3150_v45 }
 0x87a   :  { %2780 = vmatprep.subr.bf16.mxu0 %v2992_v1 }
 0x87b   :  { %v810_v11 = vpop.permute.xlu0 %809 }
 0x87c   :  { %2553 = vmatmul.mubr.msk.f32.vlgmr.msra.gmra.mrb[4].mxu0 %vm76_vm4, %v810_v11 }
 0x87d   :  { %2782 = vmatpush3.bf16.msra.mxu0 %v3080_v7  ;;  %2574 = vmatprep.mubr.msk.f32.mxu0 %vm2993_vm0, %v2994_v2 }
 0x87e   :  { %2783 = vmatprep.subr.bf16.mxu0 %v2992_v1 }
 0x881   :  { %2785 = vmatpush3.bf16.msra.mxu0 %v3089_v10 }
 0x882   :  { %2792 = vmatprep.subr.bf16.mxu0 %v2992_v1 }
 0x884   :  { %2575 = vmatmul.mubr.msk.f32.vlgmr.msra.gmra.mrb[6].mxu0 %vm76_vm4, %v810_v11  ;;  %v985_v12 = vpop.permute.xlu1 %984 }
 0x885   :  { %2794 = vmatpush3.bf16.msra.mxu0 %v3121_v36  ;;  %2596 = vmatprep.mubr.msk.f32.mxu0 %vm2993_vm0, %v2994_v2  ;;  %v987_v18 = vmul.f32 %v3100_v13, %v985_v12 }
 0x886   :  { %2795 = vmatprep.subr.bf16.mxu0 %v2992_v1 }
 0x887   :  { %v988_v21 = vadd.f32 %v3106_v16, %v987_v18 }
 0x889   :  { %2797 = vmatpush3.bf16.msra.mxu0 %v3124_v38 }
 0x88a   :  { %2804 = vmatprep.subr.bf16.mxu0 %v2992_v1 }
 0x94f   :  { %v879_v14 = vpop.f32.mrb[4].mxu0 }
 0x950   :  { %v2866_v15 = vadd.f32 %v3178_v50, %v879_v14  ;;  %v2554_v17 = vpop.f32.mrb[5].mxu0 }
 0x952   :  { %v884_v20 = vmul.f32 %v2866_v15, %v3109_v19 }
 0x954   :  { %2921 = vtanh.f32 %v884_v20 }
 0x957   :  { %v1055_v22 = vpop.f32.mrb[6].mxu0 }
 0x958   :  { %v1059_v23 = vadd.f32 %v1055_v22, %v988_v21  ;;  %v2576_v24 = vpop.f32.mrb[7].mxu0 }
 0x95a   :  { %v1060_v26 = vmul.f32 %v1059_v23, %v3109_v19 }
 0x95c   :  { %2923 = vtanh.f32 %v1060_v26 }
 0x95e   :  { %v2922_v27 = vpop.eup %2921 }
 0x95f   :  { %v886_v28 = vmul.f32 %v2922_v27, %v3109_v19 }
 0x961   :  { %v887_v29 = vadd.f32 %v886_v28, %v3112_v25 }
 0x963   :  { %890 = vrot.lane.b32.xlu0 %v887_v29, %s2997_s1  ;;  %v888_v39 = vmul.f32 %v887_v29, %v3242_v59 }
 0x966   :  { %v2924_v30 = vpop.eup %2923 }
 0x967   :  { %v1062_v31 = vmul.f32 %v2924_v30, %v3109_v19 }
 0x969   :  { %v1063_v32 = vadd.f32 %v1062_v31, %v3112_v25 }
 0x96b   :  { %1066 = vrot.lane.b32.xlu1 %v1063_v32, %s2997_s1  ;;  %v1064_v43 = vmul.f32 %v1063_v32, %v3246_v62 }
 0x9d5   :  { %v891_v33 = vpop.permute.xlu0 %890 }
 0x9d6   :  { %v893_v34 = vmul.f32 %v891_v33, %v887_v29 }
 0x9d8   :  { %895 = vrot.lane.b32.xlu0 %v893_v34, %s2998_s2 }
 0x9dd   :  { %v1067_v35 = vpop.permute.xlu1 %1066 }
 0x9de   :  { %v1069_v37 = vmul.f32 %v1067_v35, %v1063_v32 }
 0x9e0   :  { %1071 = vrot.lane.b32.xlu1 %v1069_v37, %s2998_s2 }
 0xa4a   :  { %v896_v40 = vpop.permute.xlu0 %895 }
 0xa4b   :  { %v3291_v42 = vadd.f32 %v896_v40, %v888_v39 }
 0xa4d   :  { %2925 = vtanh.f32 %v3291_v42 }
 0xa52   :  { %v1072_v44 = vpop.permute.xlu1 %1071 }
 0xa53   :  { %v3295_v46 = vadd.f32 %v1072_v44, %v1064_v43 }
 0xa55   :  { %2927 = vtanh.f32 %v3295_v46 }
 0xa57   :  { %v2926_v47 = vpop.eup %2925 }
 0xa58   :  { %901 = vrot.lane.b32.xlu0 %v2926_v47, %s2997_s1 }
 0xa5f   :  { %v2928_v48 = vpop.eup %2927 }
 0xa60   :  { %1077 = vrot.lane.b32.xlu1 %v2928_v48, %s2997_s1 }
 0xaca   :  { %v902_v49 = vpop.permute.xlu0 %901 }
 0xacb   :  { %v904_v51 = vmul.f32 %v902_v49, %v887_v29 }
 0xacd   :  { %906 = vrot.lane.b32.xlu0 %v904_v51, %s2998_s2 }
 0xad1   :  { %1257 = vperm.xlu0 %2899, %v2319_v52  }
 0xad2   :  { %v1078_v53 = vpop.permute.xlu1 %1077 }
 0xad3   :  { %v1080_v54 = vmul.f32 %v1078_v53, %v1063_v32  ;;  %v2323_v32 = vld [vmem:[%s3499_s0 + $0x28] sm:$0xff] }
 0xad5   :  { %1082 = vrot.lane.b32.xlu1 %v1080_v54, %s2998_s2 }
 0xb3f   :  { %v907_v55 = vpop.permute.xlu0 %906 }
 0xb40   :  { %2564 = vmatmul.mubr.msk.f32.vlgmr.msra.gmra.mrb[6].mxu1 %vm76_vm4, %v907_v55 }
 0xb41   :  { %2788 = vmatpush3.bf16.msra.mxu1 %v3136_v41  ;;  %2585 = vmatprep.mubr.msk.f32.mxu1 %vm2993_vm0, %v2994_v2 }
 0xb42   :  { %2789 = vmatprep.subr.bf16.mxu1 %v2992_v1 }
 0xb45   :  { %2791 = vmatpush3.bf16.msra.mxu1 %v3150_v45 }
 0xb46   :  { %2798 = vmatprep.subr.bf16.mxu1 %v2992_v1 }
 0xb47   :  { %v1083_v56 = vpop.permute.xlu1 %1082 }
 0xb48   :  { %2586 = vmatmul.mubr.msk.f32.vlgmr.msra.gmra.mrb[6].mxu1 %vm76_vm4, %v1083_v56 }
 0xb49   :  { %2800 = vmatpush3.bf16.msra.mxu1 %v3080_v7  ;;  %2607 = vmatprep.mubr.msk.f32.mxu1 %vm2993_vm0, %v2994_v2 }
 0xb4a   :  { %2801 = vmatprep.subr.bf16.mxu1 %v2992_v1 }
 0xb4d   :  { %2803 = vmatpush3.bf16.msra.mxu1 %v3089_v10 }
 0xb4e   :  { %2810 = vmatprep.subr.bf16.mxu1 %v2992_v1 }
 0xb50   :  { %2608 = vmatmul.mubr.msk.f32.vlgmr.msra.gmra.mrb[8].mxu1 %vm76_vm4, %v1083_v56  ;;  %v1258_v57 = vpop.permute.xlu0 %1257 }
 0xb51   :  { %2812 = vmatpush3.bf16.msra.mxu1 %v3121_v36  ;;  %2629 = vmatprep.mubr.msk.f32.mxu1 %vm2993_vm0, %v2994_v2  ;;  %v1260_v61 = vmul.f32 %v3100_v13, %v1258_v57 }
 0xb52   :  { %2813 = vmatprep.subr.bf16.mxu1 %v2992_v1 }
 0xb53   :  { %v1261_v63 = vadd.f32 %v3106_v16, %v1260_v61 }
 0xb55   :  { %2815 = vmatpush3.bf16.msra.mxu1 %v3124_v38 }
 0xb56   :  { %2822 = vmatprep.subr.bf16.mxu1 %v2992_v1 }
 0xc1b   :  { %v1152_v58 = vpop.f32.mrb[6].mxu1 }
 0xc1c   :  { %v2867_v59 = vadd.f32 %v3178_v50, %v1152_v58  ;;  %v2587_v60 = vpop.f32.mrb[7].mxu1 }
 0xc1e   :  { %v1157_v62 = vmul.f32 %v2867_v59, %v3109_v19 }
 0xc20   :  { %2929 = vtanh.f32 %v1157_v62 }
 0xc23   :  { %v1328_v0 = vpop.f32.mrb[8].mxu1 }
 0xc24   :  { %v1332_v3 = vadd.f32 %v1328_v0, %v1261_v63  ;;  %v2609_v4 = vpop.f32.mrb[9].mxu1 }
 0xc26   :  { %v1333_v5 = vmul.f32 %v1332_v3, %v3109_v19 }
 0xc28   :  { %2931 = vtanh.f32 %v1333_v5 }
 0xc2a   :  { %v2930_v6 = vpop.eup %2929 }
 0xc2b   :  { %v1159_v8 = vmul.f32 %v2930_v6, %v3109_v19 }
 0xc2d   :  { %v1160_v9 = vadd.f32 %v1159_v8, %v3112_v25 }
 0xc2f   :  { %1163 = vrot.lane.b32.xlu1 %v1160_v9, %s2997_s1  ;;  %v1161_v21 = vmul.f32 %v1160_v9, %v3291_v42 }
 0xc32   :  { %v2932_v11 = vpop.eup %2931 }
 0xc33   :  { %v1335_v12 = vmul.f32 %v2932_v11, %v3109_v19 }
 0xc35   :  { %v1336_v14 = vadd.f32 %v1335_v12, %v3112_v25 }
 0xc37   :  { %1339 = vrot.lane.b32.xlu0 %v1336_v14, %s2997_s1  ;;  %v1337_v24 = vmul.f32 %v1336_v14, %v3295_v46 }
 0xca1   :  { %v1164_v15 = vpop.permute.xlu1 %1163 }
 0xca2   :  { %v1166_v17 = vmul.f32 %v1164_v15, %v1160_v9 }
 0xca4   :  { %1168 = vrot.lane.b32.xlu1 %v1166_v17, %s2998_s2 }
 0xca9   :  { %v1340_v18 = vpop.permute.xlu0 %1339 }
 0xcaa   :  { %v1342_v20 = vmul.f32 %v1340_v18, %v1336_v14 }
 0xcac   :  { %1344 = vrot.lane.b32.xlu0 %v1342_v20, %s2998_s2 }
 0xd16   :  { %v1169_v22 = vpop.permute.xlu1 %1168 }
 0xd17   :  { %v3340_v23 = vadd.f32 %v1169_v22, %v1161_v21 }
 0xd19   :  { %2933 = vtanh.f32 %v3340_v23 }
 0xd1e   :  { %v1345_v26 = vpop.permute.xlu0 %1344 }
 0xd1f   :  { %v3344_v27 = vadd.f32 %v1345_v26, %v1337_v24 }
 0xd21   :  { %2935 = vtanh.f32 %v3344_v27 }
 0xd23   :  { %v2934_v28 = vpop.eup %2933 }
 0xd24   :  { %1174 = vrot.lane.b32.xlu1 %v2934_v28, %s2997_s1 }
 0xd2b   :  { %v2936_v29 = vpop.eup %2935 }
 0xd2c   :  { %1350 = vrot.lane.b32.xlu0 %v2936_v29, %s2997_s1 }
 0xd96   :  { %v1175_v30 = vpop.permute.xlu1 %1174 }
 0xd97   :  { %v1177_v31 = vmul.f32 %v1175_v30, %v1160_v9 }
 0xd99   :  { %1179 = vrot.lane.b32.xlu1 %v1177_v31, %s2998_s2 }
 0xd9d   :  { %1530 = vperm.xlu1 %2900, %v2323_v32  }
 0xd9e   :  { %v1351_v33 = vpop.permute.xlu0 %1350 }
 0xd9f   :  { %v1353_v34 = vmul.f32 %v1351_v33, %v1336_v14  ;;  %v2327_v14 = vld [vmem:[%s3499_s0 + $0x30] sm:$0xff] }
 0xda1   :  { %1355 = vrot.lane.b32.xlu0 %v1353_v34, %s2998_s2 }
 0xe0b   :  { %v1180_v35 = vpop.permute.xlu1 %1179 }
 0xe0c   :  { %2597 = vmatmul.mubr.msk.f32.vlgmr.msra.gmra.mrb[8].mxu0 %vm76_vm4, %v1180_v35 }
 0xe0d   :  { %2806 = vmatpush3.bf16.msra.mxu0 %v3136_v41  ;;  %2618 = vmatprep.mubr.msk.f32.mxu0 %vm2993_vm0, %v2994_v2 }
 0xe0e   :  { %2807 = vmatprep.subr.bf16.mxu0 %v2992_v1 }
 0xe11   :  { %2809 = vmatpush3.bf16.msra.mxu0 %v3150_v45 }
 0xe12   :  { %2816 = vmatprep.subr.bf16.mxu0 %v2992_v1 }
 0xe13   :  { %v1356_v37 = vpop.permute.xlu0 %1355 }
 0xe14   :  { %2619 = vmatmul.mubr.msk.f32.vlgmr.msra.gmra.mrb[8].mxu0 %vm76_vm4, %v1356_v37 }
 0xe15   :  { %2818 = vmatpush3.bf16.msra.mxu0 %v3080_v7  ;;  %2640 = vmatprep.mubr.msk.f32.mxu0 %vm2993_vm0, %v2994_v2 }
 0xe16   :  { %2819 = vmatprep.subr.bf16.mxu0 %v2992_v1 }
 0xe19   :  { %2821 = vmatpush3.bf16.msra.mxu0 %v3089_v10 }
 0xe1a   :  { %2828 = vmatprep.subr.bf16.mxu0 %v2992_v1 }
 0xe1c   :  { %2641 = vmatmul.mubr.msk.f32.vlgmr.msra.gmra.mrb[10].mxu0 %vm76_vm4, %v1356_v37  ;;  %v1531_v39 = vpop.permute.xlu1 %1530 }
 0xe1d   :  { %2830 = vmatpush3.bf16.msra.mxu0 %v3121_v36  ;;  %2662 = vmatprep.mubr.msk.f32.mxu0 %vm2993_vm0, %v2994_v2  ;;  %v1533_v44 = vmul.f32 %v3100_v13, %v1531_v39 }
 0xe1e   :  { %2831 = vmatprep.subr.bf16.mxu0 %v2992_v1 }
 0xe1f   :  { %v1534_v47 = vadd.f32 %v3106_v16, %v1533_v44 }
 0xe21   :  { %2833 = vmatpush3.bf16.msra.mxu0 %v3124_v38 }
 0xe22   :  { %2840 = vmatprep.subr.bf16.mxu0 %v2992_v1 }
 0xee7   :  { %v1425_v40 = vpop.f32.mrb[8].mxu0 }
 0xee8   :  { %v2868_v42 = vadd.f32 %v3178_v50, %v1425_v40  ;;  %v2620_v43 = vpop.f32.mrb[9].mxu0 }
 0xeea   :  { %v1430_v46 = vmul.f32 %v2868_v42, %v3109_v19 }
 0xeec   :  { %2937 = vtanh.f32 %v1430_v46 }
 0xeef   :  { %v1601_v48 = vpop.f32.mrb[10].mxu0 }
 0xef0   :  { %v1605_v49 = vadd.f32 %v1601_v48, %v1534_v47  ;;  %v2642_v51 = vpop.f32.mrb[11].mxu0 }
 0xef2   :  { %v1606_v52 = vmul.f32 %v1605_v49, %v3109_v19 }
 0xef4   :  { %2939 = vtanh.f32 %v1606_v52 }
 0xef6   :  { %v2938_v53 = vpop.eup %2937 }
 0xef7   :  { %v1432_v54 = vmul.f32 %v2938_v53, %v3109_v19 }
 0xef9   :  { %v1433_v55 = vadd.f32 %v1432_v54, %v3112_v25 }
 0xefb   :  { %1436 = vrot.lane.b32.xlu0 %v1433_v55, %s2997_s1  ;;  %v1434_v63 = vmul.f32 %v1433_v55, %v3340_v23 }
 0xefe   :  { %v2940_v56 = vpop.eup %2939 }
 0xeff   :  { %v1608_v57 = vmul.f32 %v2940_v56, %v3109_v19  ;;  %v2331_v56 = vld [vmem:[%s3499_s0 + $0x38] sm:$0xff] }
 0xf01   :  { %v1609_v58 = vadd.f32 %v1608_v57, %v3112_v25 }
 0xf03   :  { %1612 = vrot.lane.b32.xlu1 %v1609_v58, %s2997_s1  ;;  %v1610_v4 = vmul.f32 %v1609_v58, %v3344_v27 }
 0xf6d   :  { %v1437_v59 = vpop.permute.xlu0 %1436 }
 0xf6e   :  { %v1439_v60 = vmul.f32 %v1437_v59, %v1433_v55 }
 0xf70   :  { %1441 = vrot.lane.b32.xlu0 %v1439_v60, %s2998_s2 }
 0xf75   :  { %v1613_v61 = vpop.permute.xlu1 %1612 }
 0xf76   :  { %v1615_v62 = vmul.f32 %v1613_v61, %v1609_v58 }
 0xf78   :  { %1617 = vrot.lane.b32.xlu1 %v1615_v62, %s2998_s2 }
 0xfe2   :  { %v1442_v0 = vpop.permute.xlu0 %1441 }
 0xfe3   :  { %v3389_v3 = vadd.f32 %v1442_v0, %v1434_v63 }
 0xfe5   :  { %2941 = vtanh.f32 %v3389_v3 }
 0xfea   :  { %v1618_v5 = vpop.permute.xlu1 %1617 }
 0xfeb   :  { %v3393_v6 = vadd.f32 %v1618_v5, %v1610_v4 }
 0xfed   :  { %2943 = vtanh.f32 %v3393_v6 }
 0xfef   :  { %v2942_v8 = vpop.eup %2941 }
 0xff0   :  { %1447 = vrot.lane.b32.xlu0 %v2942_v8, %s2997_s1 }
 0xff7   :  { %v2944_v9 = vpop.eup %2943 }
 0xff8   :  { %1623 = vrot.lane.b32.xlu1 %v2944_v9, %s2997_s1 }
0x1062   :  { %v1448_v11 = vpop.permute.xlu0 %1447 }
0x1063   :  { %v1450_v12 = vmul.f32 %v1448_v11, %v1433_v55 }
0x1065   :  { %1452 = vrot.lane.b32.xlu0 %v1450_v12, %s2998_s2 }
0x1069   :  { %1803 = vperm.xlu0 %2899, %v2327_v14  }
0x106a   :  { %v1624_v15 = vpop.permute.xlu1 %1623 }
0x106b   :  { %v1626_v17 = vmul.f32 %v1624_v15, %v1609_v58 }
0x106d   :  { %1628 = vrot.lane.b32.xlu1 %v1626_v17, %s2998_s2 }
0x10d7   :  { %v1453_v18 = vpop.permute.xlu0 %1452 }
0x10d8   :  { %2630 = vmatmul.mubr.msk.f32.vlgmr.msra.gmra.mrb[10].mxu1 %vm76_vm4, %v1453_v18 }
0x10d9   :  { %2824 = vmatpush3.bf16.msra.mxu1 %v3136_v41  ;;  %2651 = vmatprep.mubr.msk.f32.mxu1 %vm2993_vm0, %v2994_v2 }
0x10da   :  { %2825 = vmatprep.subr.bf16.mxu1 %v2992_v1 }
0x10dd   :  { %2827 = vmatpush3.bf16.msra.mxu1 %v3150_v45 }
0x10de   :  { %2834 = vmatprep.subr.bf16.mxu1 %v2992_v1 }
0x10df   :  { %v1629_v20 = vpop.permute.xlu1 %1628 }
0x10e0   :  { %2652 = vmatmul.mubr.msk.f32.vlgmr.msra.gmra.mrb[10].mxu1 %vm76_vm4, %v1629_v20 }
0x10e1   :  { %2836 = vmatpush3.bf16.msra.mxu1 %v3080_v7  ;;  %2673 = vmatprep.mubr.msk.f32.mxu1 %vm2993_vm0, %v2994_v2 }
0x10e2   :  { %2837 = vmatprep.subr.bf16.mxu1 %v2992_v1 }
0x10e5   :  { %2839 = vmatpush3.bf16.msra.mxu1 %v3089_v10 }
0x10e6   :  { %2846 = vmatprep.subr.bf16.mxu1 %v2992_v1 }
0x10e8   :  { %2674 = vmatmul.mubr.msk.f32.vlgmr.msra.gmra.mrb[12].mxu1 %vm76_vm4, %v1629_v20  ;;  %v1804_v21 = vpop.permute.xlu0 %1803 }
0x10e9   :  { %2848 = vmatpush3.bf16.msra.mxu1 %v3121_v36  ;;  %2695 = vmatprep.mubr.msk.f32.mxu1 %vm2993_vm0, %v2994_v2  ;;  %v1806_v26 = vmul.f32 %v3100_v13, %v1804_v21 }
0x10ea   :  { %2849 = vmatprep.subr.bf16.mxu1 %v2992_v1 }
0x10eb   :  { %v1807_v36 = vadd.f32 %v3106_v16, %v1806_v26 }
0x10ed   :  { %2851 = vmatpush3.bf16.msra.mxu1 %v3124_v38 }
0x10ee   :  { %2858 = vmatprep.subr.bf16.mxu1 %v2992_v1 }
0x11b3   :  { %v1698_v22 = vpop.f32.mrb[10].mxu1 }
0x11b4   :  { %v2869_v23 = vadd.f32 %v3178_v50, %v1698_v22  ;;  %v2653_v24 = vpop.f32.mrb[11].mxu1 }
0x11b6   :  { %v1703_v27 = vmul.f32 %v2869_v23, %v3109_v19 }
0x11b8   :  { %2945 = vtanh.f32 %v1703_v27 }
0x11bb   :  { %v1874_v28 = vpop.f32.mrb[12].mxu1 }
0x11bc   :  { %v1878_v29 = vadd.f32 %v1874_v28, %v1807_v36  ;;  %v2675_v30 = vpop.f32.mrb[13].mxu1 }
0x11be   :  { %v1879_v31 = vmul.f32 %v1878_v29, %v3109_v19 }
0x11c0   :  { %2947 = vtanh.f32 %v1879_v31 }
0x11c2   :  { %v2946_v38 = vpop.eup %2945 }
0x11c3   :  { %v1705_v32 = vmul.f32 %v2946_v38, %v3109_v19 }
0x11c5   :  { %v1706_v33 = vadd.f32 %v1705_v32, %v3112_v25 }
0x11c7   :  { %1709 = vrot.lane.b32.xlu1 %v1706_v33, %s2997_s1  ;;  %v1707_v44 = vmul.f32 %v1706_v33, %v3389_v3 }
0x11ca   :  { %v2948_v34 = vpop.eup %2947 }
0x11cb   :  { %v1881_v35 = vmul.f32 %v2948_v34, %v3109_v19 }
0x11cd   :  { %v1882_v37 = vadd.f32 %v1881_v35, %v3112_v25 }
0x11cf   :  { %1885 = vrot.lane.b32.xlu0 %v1882_v37, %s2997_s1  ;;  %v1883_v48 = vmul.f32 %v1882_v37, %v3393_v6 }
0x1239   :  { %v1710_v39 = vpop.permute.xlu1 %1709 }
0x123a   :  { %v1712_v40 = vmul.f32 %v1710_v39, %v1706_v33 }
0x123c   :  { %1714 = vrot.lane.b32.xlu1 %v1712_v40, %s2998_s2 }
0x1241   :  { %v1886_v42 = vpop.permute.xlu0 %1885 }
0x1242   :  { %v1888_v43 = vmul.f32 %v1886_v42, %v1882_v37 }
0x1244   :  { %1890 = vrot.lane.b32.xlu0 %v1888_v43, %s2998_s2 }
0x12ae   :  { %v1715_v46 = vpop.permute.xlu1 %1714 }
0x12af   :  { %v1717_v47 = vadd.f32 %v1715_v46, %v1707_v44 }
0x12b1   :  { %2949 = vtanh.f32 %v1717_v47 }
0x12b6   :  { %v1891_v49 = vpop.permute.xlu0 %1890 }
0x12b7   :  { %v1893_v51 = vadd.f32 %v1891_v49, %v1883_v48 }
0x12b9   :  { %2951 = vtanh.f32 %v1893_v51 }
0x12bb   :  { %v2950_v52 = vpop.eup %2949 }
0x12bc   :  { %1720 = vrot.lane.b32.xlu1 %v2950_v52, %s2997_s1  ;;  %v2335_v52 = vld [vmem:[#allocation2] ss:$0 sm:$0xff] }
0x12c3   :  { %v2952_v53 = vpop.eup %2951 }
0x12c4   :  { %1896 = vrot.lane.b32.xlu0 %v2952_v53, %s2997_s1 }
0x132e   :  { %v1721_v54 = vpop.permute.xlu1 %1720 }
0x132f   :  { %v1723_v55 = vmul.f32 %v1721_v54, %v1706_v33 }
0x1331   :  { %1725 = vrot.lane.b32.xlu1 %v1723_v55, %s2998_s2 }
0x1335   :  { %2076 = vperm.xlu1 %2900, %v2331_v56  }
0x1336   :  { %v1897_v57 = vpop.permute.xlu0 %1896 }
0x1337   :  { %v1899_v58 = vmul.f32 %v1897_v57, %v1882_v37 }
0x1339   :  { %1901 = vrot.lane.b32.xlu0 %v1899_v58, %s2998_s2 }
0x13a3   :  { %v1726_v59 = vpop.permute.xlu1 %1725 }
0x13a4   :  { %2663 = vmatmul.mubr.msk.f32.vlgmr.msra.gmra.mrb[12].mxu0 %vm76_vm4, %v1726_v59 }
0x13a5   :  { %2842 = vmatpush3.bf16.msra.mxu0 %v3136_v41  ;;  %2684 = vmatprep.mubr.msk.f32.mxu0 %vm2993_vm0, %v2994_v2 }
0x13a6   :  { %2843 = vmatprep.subr.bf16.mxu0 %v2992_v1 }
0x13a9   :  { %2845 = vmatpush3.bf16.msra.mxu0 %v3150_v45 }
0x13aa   :  { %2852 = vmatprep.subr.bf16.mxu0 %v2992_v1 }
0x13ab   :  { %v1902_v60 = vpop.permute.xlu0 %1901 }
0x13ac   :  { %2685 = vmatmul.mubr.msk.f32.vlgmr.msra.gmra.mrb[12].mxu0 %vm76_vm4, %v1902_v60 }
0x13ad   :  { %2854 = vmatpush3.bf16.msra.mxu0 %v3080_v7  ;;  %2706 = vmatprep.mubr.msk.f32.mxu0 %vm2993_vm0, %v2994_v2 }
0x13ae   :  { %2855 = vmatprep.subr.bf16.mxu0 %v2992_v1 }
0x13b1   :  { %2857 = vmatpush3.bf16.msra.mxu0 %v3089_v10 }
0x13b4   :  { %2707 = vmatmul.mubr.msk.f32.vlgmr.msra.gmra.mrb[14].mxu0 %vm76_vm4, %v1902_v60  ;;  %v2077_v61 = vpop.permute.xlu1 %2076 }
0x13b5   :  { %v2079_v3 = vmul.f32 %v3100_v13, %v2077_v61 }
0x13b7   :  { %v2080_v7 = vadd.f32 %v3106_v16, %v2079_v3 }
0x147f   :  { %v1971_v62 = vpop.f32.mrb[12].mxu0 }
0x1480   :  { %v2870_v63 = vadd.f32 %v3178_v50, %v1971_v62  ;;  %v2686_v0 = vpop.f32.mrb[13].mxu0 }
0x1482   :  { %v1976_v4 = vmul.f32 %v2870_v63, %v3109_v19 }
0x1484   :  { %2953 = vtanh.f32 %v1976_v4 }
0x1487   :  { %v2147_v5 = vpop.f32.mrb[14].mxu0 }
0x1488   :  { %v2151_v6 = vadd.f32 %v2147_v5, %v2080_v7  ;;  %v2708_v8 = vpop.f32.mrb[15].mxu0 }
0x148a   :  { %v2152_v9 = vmul.f32 %v2151_v6, %v3109_v19 }
0x148c   :  { %2955 = vtanh.f32 %v2152_v9 }
0x148e   :  { %v2954_v10 = vpop.eup %2953 }
0x148f   :  { %v1978_v11 = vmul.f32 %v2954_v10, %v3109_v19 }
0x1491   :  { %v1979_v12 = vadd.f32 %v1978_v11, %v3112_v25 }
0x1493   :  { %1982 = vrot.lane.b32.xlu0 %v1979_v12, %s2997_s1  ;;  %v1980_v21 = vmul.f32 %v1979_v12, %v1717_v47 }
0x1496   :  { %v2956_v14 = vpop.eup %2955 }
0x1497   :  { %v2154_v13 = vmul.f32 %v2956_v14, %v3109_v19 }
0x1499   :  { %v2155_v15 = vadd.f32 %v2154_v13, %v3112_v25 }
0x149b   :  { %2158 = vrot.lane.b32.xlu1 %v2155_v15, %s2997_s1  ;;  %v2156_v24 = vmul.f32 %v2155_v15, %v1893_v51 }
0x1505   :  { %v1983_v16 = vpop.permute.xlu0 %1982 }
0x1506   :  { %v1985_v17 = vmul.f32 %v1983_v16, %v1979_v12 }
0x1508   :  { %1987 = vrot.lane.b32.xlu0 %v1985_v17, %s2998_s2 }
0x150d   :  { %v2159_v18 = vpop.permute.xlu1 %2158 }
0x150e   :  { %v2161_v20 = vmul.f32 %v2159_v18, %v2155_v15 }
0x1510   :  { %2163 = vrot.lane.b32.xlu1 %v2161_v20, %s2998_s2 }
0x157a   :  { %v1988_v22 = vpop.permute.xlu0 %1987 }
0x157b   :  { %v1990_v23 = vadd.f32 %v1988_v22, %v1980_v21 }
0x157d   :  { %2957 = vtanh.f32 %v1990_v23 }
0x1582   :  { %v2164_v26 = vpop.permute.xlu1 %2163 }
0x1583   :  { %v2166_v27 = vadd.f32 %v2164_v26, %v2156_v24 }
0x1585   :  { %2959 = vtanh.f32 %v2166_v27 }
0x1587   :  { %v2958_v36 = vpop.eup %2957 }
0x1588   :  { %1993 = vrot.lane.b32.xlu0 %v2958_v36, %s2997_s1 }
0x158f   :  { %v2960_v28 = vpop.eup %2959 }
0x1590   :  { %2169 = vrot.lane.b32.xlu1 %v2960_v28, %s2997_s1 }
0x15fa   :  { %v1994_v29 = vpop.permute.xlu0 %1993 }
0x15fb   :  { %v1996_v30 = vmul.f32 %v1994_v29, %v1979_v12 }
0x15fd   :  { %1998 = vrot.lane.b32.xlu0 %v1996_v30, %s2998_s2 }
0x1602   :  { %v2170_v31 = vpop.permute.xlu1 %2169 }
0x1603   :  { %v2172_v38 = vmul.f32 %v2170_v31, %v2155_v15 }
0x1605   :  { %2174 = vrot.lane.b32.xlu1 %v2172_v38, %s2998_s2 }
0x166f   :  { %v1999_v32 = vpop.permute.xlu0 %1998 }
0x1670   :  { %2696 = vmatmul.mubr.msk.f32.vlgmr.msra.gmra.mrb[14].mxu1 %vm76_vm4, %v1999_v32 }
0x1671   :  { %2860 = vmatpush3.bf16.msra.mxu1 %v3136_v41  ;;  %2717 = vmatprep.mubr.msk.f32.mxu1 %vm2993_vm0, %v2994_v2 }
0x1672   :  { %2861 = vmatprep.subr.bf16.mxu1 %v2992_v1 }
0x1675   :  { %2863 = vmatpush3.bf16.msra.mxu1 %v3150_v45  ;;  %v2334_v45 = vld [vmem:[%s3506_s7] ss:$0 sm:$0xff] }
0x1677   :  { %v2175_v33 = vpop.permute.xlu1 %2174 }
0x1678   :  { %2718 = vmatmul.mubr.msk.f32.vlgmr.msra.gmra.mrb[14].mxu1 %vm76_vm4, %v2175_v33 }
0x174b   :  { %v2244_v34 = vpop.f32.mrb[14].mxu1 }
0x174c   :  { %v2871_v35 = vadd.f32 %v3178_v50, %v2244_v34  ;;  %v2719_v37 = vpop.f32.mrb[15].mxu1 }
0x174e   :  { %v2249_v39 = vmul.f32 %v2871_v35, %v3109_v19 }
0x1750   :  { %2961 = vtanh.f32 %v2249_v39 }
0x175a   :  { %v2962_v40 = vpop.eup %2961 }
0x175b   :  { %v2251_v41 = vmul.f32 %v2962_v40, %v3109_v19 }
0x175d   :  { %v2252_v42 = vadd.f32 %v2251_v41, %v3112_v25 }
0x175f   :  { %2255 = vrot.lane.b32.xlu0 %v2252_v42, %s2997_s1  ;;  %v2253_v50 = vmul.f32 %v2252_v42, %v1990_v23 }
0x17d1   :  { %v2256_v1 = vpop.permute.xlu0 %2255 }
0x17d2   :  { %v2258_v2 = vmul.f32 %v2256_v1, %v2252_v42 }
0x17d4   :  { %2260 = vrot.lane.b32.xlu1 %v2258_v2, %s2998_s2 }
0x17d8   :  { %2276 = vrot.lane.b32.xlu1 %v2334_v45, %s2999_s14 }
0x1846   :  { %v2261_v43 = vpop.permute.xlu1 %2260 }
0x1847   :  { %v2263_v44 = vadd.f32 %v2261_v43, %v2253_v50 }
0x1849   :  { %2963 = vtanh.f32 %v2263_v44 }
0x184a   :  { %v2277_v25 = vpop.permute.xlu1 %2276 }
0x1853   :  { %v2964_v46 = vpop.eup %2963 }
0x1854   :  { %2266 = vrot.lane.b32.xlu0 %v2964_v46, %s2997_s1 }
0x18c6   :  { %v2267_v19 = vpop.permute.xlu0 %2266 }
0x18c7   :  { %v2269_v47 = vmul.f32 %v2267_v19, %v2252_v42 }
0x18c9   :  { %v2279_v48 = vmul.f32 %v2277_v25, %v2269_v47 }
0x18cb   :  { %2281 = vrot.lane.b32.xlu0 %v2279_v48, %s2998_s2 }
0x193d   :  { %v2282_v49 = vpop.permute.xlu0 %2281 }
0x193e   :  { %v2284_v51 = vsel %vm76_vm4, %v2282_v49, 0.0 }
0x193f   :  { %2285 = vadd.xlane.f32.xlu1 %v2284_v51 }
0x19cc   :  { %v2286_v53 = vpop.xlane.xlu1 %2285 }
0x19cd   :  { %v2294_v54 = vadd.f32 %v2335_v52, %v2286_v53 }
0x19cf   :  { %2296 = vst.msk [vmem:[%s3508_s9] sm:$0xff] %vm2295_vm5, %v2294_v54 }
0x19d0   :  { %2301 = vsyncpa [#allocation4], 1 }

</bundles_post_ra>
